<compile_context>
chip_gen: v5e
topology: v5e:2x2
jax: 0.10.0
libtpu: 0.0.40
codegen_flags: <defaults>
</compile_context>

<pallas_src>
import functools

import jax
import jax.numpy as jnp
import numpy as np
from jax import lax
from jax.experimental import pallas as pl
from jax.experimental.pallas import tpu as pltpu


# -----------------------------------------------------------------------------
# Fused Pallas kernel: all 20 IMM blocks (60 conv-couple updates) in one call.
# -----------------------------------------------------------------------------
def _imm_irm_kernel(y_ref, x_ref, wy_ref, wx_ref, b_ref, o_ref,
                    y1s, y2s, y3s, pad_ref, *, C, Cx, H, W, rev):
    P = H * W
    blk = pl.program_id(1)
    nblk = pl.num_programs(1)
    halo = W + 1  # left/right halo of the padded staging buffer

    @pl.when(blk == 0)
    def _init():
        # Halo columns of the staging buffer must be zero; the interior is
        # overwritten by every conv, so zero once per batch element.
        pad_ref[...] = jnp.zeros_like(pad_ref)
        y1s[...] = y_ref[0, 0 * C:1 * C, :]
        y2s[...] = y_ref[0, 1 * C:2 * C, :]
        y3s[...] = y_ref[0, 2 * C:3 * C, :]

    x = x_ref[0]  # (Cx, P) conditioning input, constant across blocks

    # Column-validity masks for the horizontal taps (kw=0 reads col-1,
    # kw=2 reads col+1); row validity is handled by the zero halo.
    col = lax.broadcasted_iota(jnp.int32, (1, P), 1) % W
    mask_l = (col != 0).astype(jnp.float32)
    mask_r = (col != W - 1).astype(jnp.float32)

    def conv_couple(conv_idx, ya, yb, res):
        # Channel mix for all 9 taps at once: rows [t*C:(t+1)*C] of `proj` hold
        # tap t's per-output-channel contribution before the spatial shift.
        wa = wy_ref[0, 2 * conv_idx + 0]   # (9C, C)   weights for branch a
        wb = wy_ref[0, 2 * conv_idx + 1]   # (9C, C)   weights for branch b
        wx = wx_ref[0, conv_idx]           # (9C, Cx)  weights for x
        proj = (jnp.dot(wa, ya, preferred_element_type=jnp.float32)
                + jnp.dot(wb, yb, preferred_element_type=jnp.float32)
                + jnp.dot(wx, x, preferred_element_type=jnp.float32))  # (9C, P)
        # Stage into the zero-padded buffer; taps whose source row falls
        # outside the image read zeros from the halo.
        pad_ref[:, halo:halo + P] = proj

        conv = b_ref[0, conv_idx]          # (C, 1) bias, broadcasts over lanes
        for kh in range(3):
            for kw in range(3):
                t = kh * 3 + kw
                start = halo + (kh - 1) * W + (kw - 1)
                piece = pad_ref[t * C:(t + 1) * C, start:start + P]  # (C, P)
                if kw == 0:
                    piece = piece * mask_l
                elif kw == 2:
                    piece = piece * mask_r
                conv = conv + piece
        return res - conv if rev else res + conv

    if not rev:
        y1s[...] = conv_couple(0, y2s[...], y3s[...], y1s[...])
        y2s[...] = conv_couple(1, y1s[...], y3s[...], y2s[...])
        y3s[...] = conv_couple(2, y1s[...], y2s[...], y3s[...])
    else:
        y3s[...] = conv_couple(2, y1s[...], y2s[...], y3s[...])
        y2s[...] = conv_couple(1, y1s[...], y3s[...], y2s[...])
        y1s[...] = conv_couple(0, y2s[...], y3s[...], y1s[...])

    @pl.when(blk == nblk - 1)
    def _finish():
        o_ref[0, 0 * C:1 * C, :] = y1s[...]
        o_ref[0, 1 * C:2 * C, :] = y2s[...]
        o_ref[0, 2 * C:3 * C, :] = y3s[...]


# -----------------------------------------------------------------------------
# IMM_IRM_net forward / inverse wrapper
# -----------------------------------------------------------------------------
def imm_irm_apply(packed, x, y, rev=False, repair=True):
    # TODO(synk): `repair` only changes an (undefined) flag forwarded into
    # IMM_block in the original; with the synthesized block rev=True behaves
    # identically for repair=True/False.
    B, Cy, H, W = y.shape
    C = Cy // 3
    Cx = x.shape[1]
    P = H * W

    wy, wx, bb = packed["w_y"], packed["w_x"], packed["b"]
    NB = wy.shape[0]
    if rev:  # run blocks inv_NB .. inv_1
        wy, wx, bb = jnp.flip(wy, 0), jnp.flip(wx, 0), jnp.flip(bb, 0)

    y_flat = y.reshape(B, Cy, P)
    x_flat = x.reshape(B, Cx, P)

    kernel = functools.partial(_imm_irm_kernel, C=C, Cx=Cx, H=H, W=W, rev=rev)
    out = pl.pallas_call(
        kernel,
        out_shape=jax.ShapeDtypeStruct((B, Cy, P), jnp.float32),
        grid=(B, NB),
        in_specs=[
            pl.BlockSpec((1, Cy, P), lambda b, k: (b, 0, 0)),
            pl.BlockSpec((1, Cx, P), lambda b, k: (b, 0, 0)),
            pl.BlockSpec((1, 6, 9 * C, C), lambda b, k: (k, 0, 0, 0)),
            pl.BlockSpec((1, 3, 9 * C, Cx), lambda b, k: (k, 0, 0, 0)),
            pl.BlockSpec((1, 3, C, 1), lambda b, k: (k, 0, 0, 0)),
        ],
        out_specs=pl.BlockSpec((1, Cy, P), lambda b, k: (b, 0, 0)),
        scratch_shapes=[
            pltpu.VMEM((C, P), jnp.float32),                      # y1
            pltpu.VMEM((C, P), jnp.float32),                      # y2
            pltpu.VMEM((C, P), jnp.float32),                      # y3
            pltpu.VMEM((9 * C, P + 2 * (W + 1)), jnp.float32),    # padded stage
        ],
        compiler_params=pltpu.CompilerParams(
            dimension_semantics=("parallel", "arbitrary")),
    )(y_flat, x_flat, wy, wx, bb)
    return out.reshape(B, Cy, H, W)


# -----------------------------------------------------------------------------
# Parameter init (20 blocks x {F,G,H} 3x3 convs) and packing for the kernel
# -----------------------------------------------------------------------------
def init_params(key, n_blocks, C, Cx):
    cin = 2 * C + Cx
    params = []
    for _ in range(n_blocks):
        block = {}
        for name in ("F", "G", "H"):
            key, kw, kb = jax.random.split(key, 3)
            w = jax.random.normal(kw, (C, cin, 3, 3), jnp.float32) * 0.02
            b = jax.random.normal(kb, (C,), jnp.float32) * 0.02
            block[name] = (w, b)
        params.append(block)
    return params


def pack_params(params, C, Cx):
    """(C, Cin, 3, 3) conv weights -> per-part (9*C, Cpart) channel-mix slabs."""
    nb = len(params)
    cin = 2 * C + Cx
    w_y = np.zeros((nb, 6, 9 * C, C), np.float32)
    w_x = np.zeros((nb, 3, 9 * C, Cx), np.float32)
    bias = np.zeros((nb, 3, C, 1), np.float32)
    for bi, blk in enumerate(params):
        for ci, name in enumerate(("F", "G", "H")):
            w, b = blk[name]
            w = np.asarray(w, np.float32)                 # (C, cin, 3, 3)
            # row index = (kh*3 + kw)*C + cout
            w9 = np.transpose(w, (2, 3, 0, 1)).reshape(9 * C, cin)
            w_y[bi, 2 * ci + 0] = w9[:, 0:C]
            w_y[bi, 2 * ci + 1] = w9[:, C:2 * C]
            w_x[bi, ci] = w9[:, 2 * C:cin]
            bias[bi, ci] = np.asarray(b, np.float32).reshape(C, 1)
    return {"w_y": jnp.asarray(w_y), "w_x": jnp.asarray(w_x),
            "b": jnp.asarray(bias)}


# -----------------------------------------------------------------------------
# Pure-JAX reference (for correctness check)
# -----------------------------------------------------------------------------
def _conv3x3_ref(inp, w, b):
    out = lax.conv_general_dilated(
        inp, w, window_strides=(1, 1), padding="SAME",
        dimension_numbers=("NCHW", "OIHW", "NCHW"),
        precision=lax.Precision.HIGHEST)
    return out + b[None, :, None, None]


def imm_irm_forward_ref(params, x, y):
    C = y.shape[1] // 3
    y1, y2, y3 = y[:, 0:C], y[:, C:2 * C], y[:, 2 * C:3 * C]
    for blk in params:
        (wF, bF), (wG, bG), (wH, bH) = blk["F"], blk["G"], blk["H"]
        y1 = y1 + _conv3x3_ref(jnp.concatenate([y2, y3, x], axis=1), wF, bF)
        y2 = y2 + _conv3x3_ref(jnp.concatenate([y1, y3, x], axis=1), wG, bG)
        y3 = y3 + _conv3x3_ref(jnp.concatenate([y1, y2, x], axis=1), wH, bH)
    return jnp.concatenate([y1, y2, y3], axis=1)


# -----------------------------------------------------------------------------
# Main
# -----------------------------------------------------------------------------
if __name__ == "__main__":
    B, H, W = 2, 16, 16
    Cx = 4                       # conditioning input channels
    C_total = 12                 # input_C passed to IMM_IRM_net
    C = C_total // 3             # per-branch channels (self.input_C)
    N_BLOCKS = 20

    key = jax.random.PRNGKey(0)
    kx, ky, kp = jax.random.split(key, 3)
    x = jax.random.normal(kx, (B, Cx, H, W), jnp.float32)
    y = jax.random.normal(ky, (B, C_total, H, W), jnp.float32)
    params = init_params(kp, N_BLOCKS, C, Cx)
    packed = pack_params(params, C, Cx)

    fwd = jax.jit(functools.partial(imm_irm_apply, rev=False, repair=True))
    bwd = jax.jit(functools.partial(imm_irm_apply, rev=True, repair=True))

    out = jax.block_until_ready(fwd(packed, x, y))
    assert out.shape == (B, C_total, H, W), out.shape
    assert bool(jnp.all(jnp.isfinite(out)))

    # Correctness vs a pure-JAX reference (HIGHEST-precision convs); loose-ish
    # tolerance covers MXU f32 accumulation drift over 60 coupling updates.
    out_ref = jax.block_until_ready(jax.jit(imm_irm_forward_ref)(params, x, y))
    np.testing.assert_allclose(np.asarray(out), np.asarray(out_ref),
                               rtol=2e-2, atol=2e-2)

    # Invertibility check: rev=True must undo rev=False (tight tolerance —
    # additive coupling inversion is exact up to float cancellation error).
    y_rec = jax.block_until_ready(bwd(packed, x, out))
    np.testing.assert_allclose(np.asarray(y_rec), np.asarray(y),
                               rtol=1e-3, atol=1e-3)

    print("KERNEL_OK")
</pallas_src>

<mosaic_0001>
module attributes {stable_mosaic.version = 11 : i64} {
  func.func @_imm_irm_kernel(%arg0: i32, %arg1: i32, %arg2: memref<1x12x256xf32, #tpu.memory_space<vmem>>, %arg3: memref<1x4x256xf32, #tpu.memory_space<vmem>>, %arg4: memref<1x6x36x4xf32, #tpu.memory_space<vmem>>, %arg5: memref<1x3x36x4xf32, #tpu.memory_space<vmem>>, %arg6: memref<1x3x4x1xf32, #tpu.memory_space<vmem>>, %arg7: memref<1x12x256xf32, #tpu.memory_space<vmem>>, %arg8: memref<4x256xf32, #tpu.memory_space<vmem>>, %arg9: memref<4x256xf32, #tpu.memory_space<vmem>>, %arg10: memref<4x256xf32, #tpu.memory_space<vmem>>, %arg11: memref<36x290xf32, #tpu.memory_space<vmem>>) attributes {dimension_semantics = [#tpu.dimension_semantics<parallel>, #tpu.dimension_semantics<arbitrary>], iteration_bounds = array<i64: 2, 20>, scalar_prefetch = 0 : i64, scratch_operands = 4 : i64, tpu.core_type = #tpu.core_type<tc>, window_params = [{transform_indices = @transform_0, window_bounds = array<i64: 1, 12, 256>}, {transform_indices = @transform_1, window_bounds = array<i64: 1, 4, 256>}, {transform_indices = @transform_2, window_bounds = array<i64: 1, 6, 36, 4>}, {transform_indices = @transform_3, window_bounds = array<i64: 1, 3, 36, 4>}, {transform_indices = @transform_4, window_bounds = array<i64: 1, 3, 4, 1>}, {transform_indices = @transform_5, window_bounds = array<i64: 1, 12, 256>}]} {
    %c0_i32 = arith.constant 0 : i32
    %0 = arith.cmpi eq, %arg1, %c0_i32 : i32
    %1 = arith.extui %0 : i1 to i32
    %c0_i32_0 = arith.constant 0 : i32
    %2 = arith.cmpi ne, %1, %c0_i32_0 : i32
    scf.if %2 {
      %cst_133 = arith.constant 0.000000e+00 : f32
      %183 = vector.broadcast %cst_133 : f32 to vector<36x290xf32>
      %c0_134 = arith.constant 0 : index
      %c0_135 = arith.constant 0 : index
      %184 = vector.load %arg11[%c0_134, %c0_135] : memref<36x290xf32, #tpu.memory_space<vmem>>, vector<36x290xf32>
      tpu.vector_store %arg11[%c0_134, %c0_135], %183 {strides = array<i32>} : memref<36x290xf32, #tpu.memory_space<vmem>>, vector<36x290xf32>,
      %c0_136 = arith.constant 0 : index
      %c0_137 = arith.constant 0 : index
      %c0_138 = arith.constant 0 : index
      %185 = vector.load %arg2[%c0_136, %c0_137, %c0_138] : memref<1x12x256xf32, #tpu.memory_space<vmem>>, vector<1x4x256xf32>
      %186 = vector.shape_cast %185 : vector<1x4x256xf32> to vector<4x256xf32>
      %c0_139 = arith.constant 0 : index
      %c0_140 = arith.constant 0 : index
      %187 = vector.load %arg8[%c0_139, %c0_140] : memref<4x256xf32, #tpu.memory_space<vmem>>, vector<4x256xf32>
      tpu.vector_store %arg8[%c0_139, %c0_140], %186 {strides = array<i32>} : memref<4x256xf32, #tpu.memory_space<vmem>>, vector<4x256xf32>,
      %c0_141 = arith.constant 0 : index
      %c4_142 = arith.constant 4 : index
      %c0_143 = arith.constant 0 : index
      %188 = vector.load %arg2[%c0_141, %c4_142, %c0_143] : memref<1x12x256xf32, #tpu.memory_space<vmem>>, vector<1x4x256xf32>
      %189 = vector.shape_cast %188 : vector<1x4x256xf32> to vector<4x256xf32>
      %c0_144 = arith.constant 0 : index
      %c0_145 = arith.constant 0 : index
      %190 = vector.load %arg9[%c0_144, %c0_145] : memref<4x256xf32, #tpu.memory_space<vmem>>, vector<4x256xf32>
      tpu.vector_store %arg9[%c0_144, %c0_145], %189 {strides = array<i32>} : memref<4x256xf32, #tpu.memory_space<vmem>>, vector<4x256xf32>,
      %c0_146 = arith.constant 0 : index
      %c8_147 = arith.constant 8 : index
      %c0_148 = arith.constant 0 : index
      %191 = vector.load %arg2[%c0_146, %c8_147, %c0_148] : memref<1x12x256xf32, #tpu.memory_space<vmem>>, vector<1x4x256xf32>
      %192 = vector.shape_cast %191 : vector<1x4x256xf32> to vector<4x256xf32>
      %c0_149 = arith.constant 0 : index
      %c0_150 = arith.constant 0 : index
      %193 = vector.load %arg10[%c0_149, %c0_150] : memref<4x256xf32, #tpu.memory_space<vmem>>, vector<4x256xf32>
      tpu.vector_store %arg10[%c0_149, %c0_150], %192 {strides = array<i32>} : memref<4x256xf32, #tpu.memory_space<vmem>>, vector<4x256xf32>,
    } else {
    }
    %c0 = arith.constant 0 : index
    %c0_1 = arith.constant 0 : index
    %c0_2 = arith.constant 0 : index
    %3 = vector.load %arg3[%c0, %c0_1, %c0_2] : memref<1x4x256xf32, #tpu.memory_space<vmem>>, vector<1x4x256xf32>
    %4 = vector.shape_cast %3 : vector<1x4x256xf32> to vector<4x256xf32>
    %5 = tpu.iota {dimensions = array<i32: 1>} : vector<1x256xi32>
    %c16_i32 = arith.constant 16 : i32
    %c0_i32_3 = arith.constant 0 : i32
    %6 = arith.cmpi eq, %c16_i32, %c0_i32_3 : i32
    %c1_i32 = arith.constant 1 : i32
    %7 = arith.select %6, %c1_i32, %c16_i32 : i32
    %8 = vector.broadcast %7 : i32 to vector<1x256xi32>
    %9 = arith.remsi %5, %8 : vector<1x256xi32>
    %c0_i32_4 = arith.constant 0 : i32
    %10 = vector.broadcast %c0_i32_4 : i32 to vector<1x256xi32>
    %11 = arith.cmpi ne, %9, %10 : vector<1x256xi32>
    %c0_i32_5 = arith.constant 0 : i32
    %12 = vector.broadcast %c0_i32_5 : i32 to vector<1x256xi32>
    %13 = arith.cmpi slt, %9, %12 : vector<1x256xi32>
    %c0_i32_6 = arith.constant 0 : i32
    %14 = arith.cmpi slt, %7, %c0_i32_6 : i32
    %15 = vector.broadcast %14 : i1 to vector<1x256xi1>
    %16 = vector.broadcast %15 : vector<1x256xi1> to vector<1x256xi1>
    %17 = arith.xori %13, %16 : vector<1x256xi1>
    %18 = arith.andi %17, %11 : vector<1x256xi1>
    %19 = vector.broadcast %7 : i32 to vector<1x256xi32>
    %20 = arith.addi %9, %19 : vector<1x256xi32>
    %21 = arith.select %18, %20, %9 : vector<1x256xi1>, vector<1x256xi32>
    %c0_i32_7 = arith.constant 0 : i32
    %22 = vector.broadcast %c0_i32_7 : i32 to vector<1x256xi32>
    %23 = arith.cmpi ne, %21, %22 : vector<1x256xi32>
    %24 = arith.extui %23 : vector<1x256xi1> to vector<1x256xi32>
    %25 = arith.sitofp %24 : vector<1x256xi32> to vector<1x256xf32>
    %c15_i32 = arith.constant 15 : i32
    %26 = vector.broadcast %c15_i32 : i32 to vector<1x256xi32>
    %27 = arith.cmpi ne, %21, %26 : vector<1x256xi32>
    %28 = arith.extui %27 : vector<1x256xi1> to vector<1x256xi32>
    %29 = arith.sitofp %28 : vector<1x256xi32> to vector<1x256xf32>
    %c0_8 = arith.constant 0 : index
    %c0_9 = arith.constant 0 : index
    %30 = vector.load %arg9[%c0_8, %c0_9] : memref<4x256xf32, #tpu.memory_space<vmem>>, vector<4x256xf32>
    %c0_10 = arith.constant 0 : index
    %c0_11 = arith.constant 0 : index
    %31 = vector.load %arg10[%c0_10, %c0_11] : memref<4x256xf32, #tpu.memory_space<vmem>>, vector<4x256xf32>
    %c0_12 = arith.constant 0 : index
    %c0_13 = arith.constant 0 : index
    %32 = vector.load %arg8[%c0_12, %c0_13] : memref<4x256xf32, #tpu.memory_space<vmem>>, vector<4x256xf32>
    %c0_14 = arith.constant 0 : index
    %c0_15 = arith.constant 0 : index
    %c0_16 = arith.constant 0 : index
    %c0_17 = arith.constant 0 : index
    %33 = vector.load %arg4[%c0_14, %c0_15, %c0_16, %c0_17] : memref<1x6x36x4xf32, #tpu.memory_space<vmem>>, vector<1x1x36x4xf32>
    %34 = vector.shape_cast %33 : vector<1x1x36x4xf32> to vector<36x4xf32>
    %c0_18 = arith.constant 0 : index
    %c1 = arith.constant 1 : index
    %c0_19 = arith.constant 0 : index
    %c0_20 = arith.constant 0 : index
    %35 = vector.load %arg4[%c0_18, %c1, %c0_19, %c0_20] : memref<1x6x36x4xf32, #tpu.memory_space<vmem>>, vector<1x1x36x4xf32>
    %36 = vector.shape_cast %35 : vector<1x1x36x4xf32> to vector<36x4xf32>
    %c0_21 = arith.constant 0 : index
    %c0_22 = arith.constant 0 : index
    %c0_23 = arith.constant 0 : index
    %c0_24 = arith.constant 0 : index
    %37 = vector.load %arg5[%c0_21, %c0_22, %c0_23, %c0_24] : memref<1x3x36x4xf32, #tpu.memory_space<vmem>>, vector<1x1x36x4xf32>
    %38 = vector.shape_cast %37 : vector<1x1x36x4xf32> to vector<36x4xf32>
    %cst = arith.constant dense<0.000000e+00> : vector<36x256xf32>
    %39 = tpu.matmul %34, %30, %cst {dimension_numbers = #tpu.dot_dimension_numbers<[1], [0], [0], [1], [0, 0, 1, 1], [], []>} : vector<36x4xf32>, vector<4x256xf32>, vector<36x256xf32> -> vector<36x256xf32>
    %cst_25 = arith.constant dense<0.000000e+00> : vector<36x256xf32>
    %40 = tpu.matmul %36, %31, %cst_25 {dimension_numbers = #tpu.dot_dimension_numbers<[1], [0], [0], [1], [0, 0, 1, 1], [], []>} : vector<36x4xf32>, vector<4x256xf32>, vector<36x256xf32> -> vector<36x256xf32>
    %41 = arith.addf %39, %40 : vector<36x256xf32>
    %cst_26 = arith.constant dense<0.000000e+00> : vector<36x256xf32>
    %42 = tpu.matmul %38, %4, %cst_26 {dimension_numbers = #tpu.dot_dimension_numbers<[1], [0], [0], [1], [0, 0, 1, 1], [], []>} : vector<36x4xf32>, vector<4x256xf32>, vector<36x256xf32> -> vector<36x256xf32>
    %43 = arith.addf %41, %42 : vector<36x256xf32>
    %c0_27 = arith.constant 0 : index
    %c17 = arith.constant 17 : index
    %44 = vector.load %arg11[%c0_27, %c17] : memref<36x290xf32, #tpu.memory_space<vmem>>, vector<36x256xf32>
    tpu.vector_store %arg11[%c0_27, %c17], %43 {strides = array<i32>} : memref<36x290xf32, #tpu.memory_space<vmem>>, vector<36x256xf32>,
    %c0_28 = arith.constant 0 : index
    %c0_29 = arith.constant 0 : index
    %c0_30 = arith.constant 0 : index
    %c0_31 = arith.constant 0 : index
    %45 = vector.load %arg6[%c0_28, %c0_29, %c0_30, %c0_31] : memref<1x3x4x1xf32, #tpu.memory_space<vmem>>, vector<1x1x4x1xf32>
    %46 = vector.shape_cast %45 : vector<1x1x4x1xf32> to vector<4x1xf32>
    %c0_32 = arith.constant 0 : index
    %c0_33 = arith.constant 0 : index
    %47 = vector.load %arg11[%c0_32, %c0_33] : memref<36x290xf32, #tpu.memory_space<vmem>>, vector<4x256xf32>
    %48 = vector.broadcast %25 : vector<1x256xf32> to vector<4x256xf32>
    %49 = arith.mulf %47, %48 : vector<4x256xf32>
    %50 = vector.broadcast %46 : vector<4x1xf32> to vector<4x256xf32>
    %51 = arith.addf %50, %49 : vector<4x256xf32>
    %c4 = arith.constant 4 : index
    %c1_34 = arith.constant 1 : index
    %52 = vector.load %arg11[%c4, %c1_34] : memref<36x290xf32, #tpu.memory_space<vmem>>, vector<4x256xf32>
    %53 = arith.addf %51, %52 : vector<4x256xf32>
    %c8 = arith.constant 8 : index
    %c2 = arith.constant 2 : index
    %54 = vector.load %arg11[%c8, %c2] : memref<36x290xf32, #tpu.memory_space<vmem>>, vector<4x256xf32>
    %55 = vector.broadcast %29 : vector<1x256xf32> to vector<4x256xf32>
    %56 = arith.mulf %54, %55 : vector<4x256xf32>
    %57 = arith.addf %53, %56 : vector<4x256xf32>
    %c12 = arith.constant 12 : index
    %c16 = arith.constant 16 : index
    %58 = vector.load %arg11[%c12, %c16] : memref<36x290xf32, #tpu.memory_space<vmem>>, vector<4x256xf32>
    %59 = vector.broadcast %25 : vector<1x256xf32> to vector<4x256xf32>
    %60 = arith.mulf %58, %59 : vector<4x256xf32>
    %61 = arith.addf %57, %60 : vector<4x256xf32>
    %c16_35 = arith.constant 16 : index
    %c17_36 = arith.constant 17 : index
    %62 = vector.load %arg11[%c16_35, %c17_36] : memref<36x290xf32, #tpu.memory_space<vmem>>, vector<4x256xf32>
    %63 = arith.addf %61, %62 : vector<4x256xf32>
    %c20 = arith.constant 20 : index
    %c18 = arith.constant 18 : index
    %64 = vector.load %arg11[%c20, %c18] : memref<36x290xf32, #tpu.memory_space<vmem>>, vector<4x256xf32>
    %65 = vector.broadcast %29 : vector<1x256xf32> to vector<4x256xf32>
    %66 = arith.mulf %64, %65 : vector<4x256xf32>
    %67 = arith.addf %63, %66 : vector<4x256xf32>
    %c24 = arith.constant 24 : index
    %c32 = arith.constant 32 : index
    %68 = vector.load %arg11[%c24, %c32] : memref<36x290xf32, #tpu.memory_space<vmem>>, vector<4x256xf32>
    %69 = vector.broadcast %25 : vector<1x256xf32> to vector<4x256xf32>
    %70 = arith.mulf %68, %69 : vector<4x256xf32>
    %71 = arith.addf %67, %70 : vector<4x256xf32>
    %c28 = arith.constant 28 : index
    %c33 = arith.constant 33 : index
    %72 = vector.load %arg11[%c28, %c33] : memref<36x290xf32, #tpu.memory_space<vmem>>, vector<4x256xf32>
    %73 = arith.addf %71, %72 : vector<4x256xf32>
    %c32_37 = arith.constant 32 : index
    %c34 = arith.constant 34 : index
    %74 = vector.load %arg11[%c32_37, %c34] : memref<36x290xf32, #tpu.memory_space<vmem>>, vector<4x256xf32>
    %75 = vector.broadcast %29 : vector<1x256xf32> to vector<4x256xf32>
    %76 = arith.mulf %74, %75 : vector<4x256xf32>
    %77 = arith.addf %73, %76 : vector<4x256xf32>
    %78 = arith.addf %32, %77 : vector<4x256xf32>
    %c0_38 = arith.constant 0 : index
    %c0_39 = arith.constant 0 : index
    %79 = vector.load %arg8[%c0_38, %c0_39] : memref<4x256xf32, #tpu.memory_space<vmem>>, vector<4x256xf32>
    tpu.vector_store %arg8[%c0_38, %c0_39], %78 {strides = array<i32>} : memref<4x256xf32, #tpu.memory_space<vmem>>, vector<4x256xf32>,
    %c0_40 = arith.constant 0 : index
    %c0_41 = arith.constant 0 : index
    %80 = vector.load %arg8[%c0_40, %c0_41] : memref<4x256xf32, #tpu.memory_space<vmem>>, vector<4x256xf32>
    %c0_42 = arith.constant 0 : index
    %c0_43 = arith.constant 0 : index
    %81 = vector.load %arg10[%c0_42, %c0_43] : memref<4x256xf32, #tpu.memory_space<vmem>>, vector<4x256xf32>
    %c0_44 = arith.constant 0 : index
    %c0_45 = arith.constant 0 : index
    %82 = vector.load %arg9[%c0_44, %c0_45] : memref<4x256xf32, #tpu.memory_space<vmem>>, vector<4x256xf32>
    %c0_46 = arith.constant 0 : index
    %c2_47 = arith.constant 2 : index
    %c0_48 = arith.constant 0 : index
    %c0_49 = arith.constant 0 : index
    %83 = vector.load %arg4[%c0_46, %c2_47, %c0_48, %c0_49] : memref<1x6x36x4xf32, #tpu.memory_space<vmem>>, vector<1x1x36x4xf32>
    %84 = vector.shape_cast %83 : vector<1x1x36x4xf32> to vector<36x4xf32>
    %c0_50 = arith.constant 0 : index
    %c3 = arith.constant 3 : index
    %c0_51 = arith.constant 0 : index
    %c0_52 = arith.constant 0 : index
    %85 = vector.load %arg4[%c0_50, %c3, %c0_51, %c0_52] : memref<1x6x36x4xf32, #tpu.memory_space<vmem>>, vector<1x1x36x4xf32>
    %86 = vector.shape_cast %85 : vector<1x1x36x4xf32> to vector<36x4xf32>
    %c0_53 = arith.constant 0 : index
    %c1_54 = arith.constant 1 : index
    %c0_55 = arith.constant 0 : index
    %c0_56 = arith.constant 0 : index
    %87 = vector.load %arg5[%c0_53, %c1_54, %c0_55, %c0_56] : memref<1x3x36x4xf32, #tpu.memory_space<vmem>>, vector<1x1x36x4xf32>
    %88 = vector.shape_cast %87 : vector<1x1x36x4xf32> to vector<36x4xf32>
    %cst_57 = arith.constant dense<0.000000e+00> : vector<36x256xf32>
    %89 = tpu.matmul %84, %80, %cst_57 {dimension_numbers = #tpu.dot_dimension_numbers<[1], [0], [0], [1], [0, 0, 1, 1], [], []>} : vector<36x4xf32>, vector<4x256xf32>, vector<36x256xf32> -> vector<36x256xf32>
    %cst_58 = arith.constant dense<0.000000e+00> : vector<36x256xf32>
    %90 = tpu.matmul %86, %81, %cst_58 {dimension_numbers = #tpu.dot_dimension_numbers<[1], [0], [0], [1], [0, 0, 1, 1], [], []>} : vector<36x4xf32>, vector<4x256xf32>, vector<36x256xf32> -> vector<36x256xf32>
    %91 = arith.addf %89, %90 : vector<36x256xf32>
    %cst_59 = arith.constant dense<0.000000e+00> : vector<36x256xf32>
    %92 = tpu.matmul %88, %4, %cst_59 {dimension_numbers = #tpu.dot_dimension_numbers<[1], [0], [0], [1], [0, 0, 1, 1], [], []>} : vector<36x4xf32>, vector<4x256xf32>, vector<36x256xf32> -> vector<36x256xf32>
    %93 = arith.addf %91, %92 : vector<36x256xf32>
    %c0_60 = arith.constant 0 : index
    %c17_61 = arith.constant 17 : index
    %94 = vector.load %arg11[%c0_60, %c17_61] : memref<36x290xf32, #tpu.memory_space<vmem>>, vector<36x256xf32>
    tpu.vector_store %arg11[%c0_60, %c17_61], %93 {strides = array<i32>} : memref<36x290xf32, #tpu.memory_space<vmem>>, vector<36x256xf32>,
    %c0_62 = arith.constant 0 : index
    %c1_63 = arith.constant 1 : index
    %c0_64 = arith.constant 0 : index
    %c0_65 = arith.constant 0 : index
    %95 = vector.load %arg6[%c0_62, %c1_63, %c0_64, %c0_65] : memref<1x3x4x1xf32, #tpu.memory_space<vmem>>, vector<1x1x4x1xf32>
    %96 = vector.shape_cast %95 : vector<1x1x4x1xf32> to vector<4x1xf32>
    %c0_66 = arith.constant 0 : index
    %c0_67 = arith.constant 0 : index
    %97 = vector.load %arg11[%c0_66, %c0_67] : memref<36x290xf32, #tpu.memory_space<vmem>>, vector<4x256xf32>
    %98 = vector.broadcast %25 : vector<1x256xf32> to vector<4x256xf32>
    %99 = arith.mulf %97, %98 : vector<4x256xf32>
    %100 = vector.broadcast %96 : vector<4x1xf32> to vector<4x256xf32>
    %101 = arith.addf %100, %99 : vector<4x256xf32>
    %c4_68 = arith.constant 4 : index
    %c1_69 = arith.constant 1 : index
    %102 = vector.load %arg11[%c4_68, %c1_69] : memref<36x290xf32, #tpu.memory_space<vmem>>, vector<4x256xf32>
    %103 = arith.addf %101, %102 : vector<4x256xf32>
    %c8_70 = arith.constant 8 : index
    %c2_71 = arith.constant 2 : index
    %104 = vector.load %arg11[%c8_70, %c2_71] : memref<36x290xf32, #tpu.memory_space<vmem>>, vector<4x256xf32>
    %105 = vector.broadcast %29 : vector<1x256xf32> to vector<4x256xf32>
    %106 = arith.mulf %104, %105 : vector<4x256xf32>
    %107 = arith.addf %103, %106 : vector<4x256xf32>
    %c12_72 = arith.constant 12 : index
    %c16_73 = arith.constant 16 : index
    %108 = vector.load %arg11[%c12_72, %c16_73] : memref<36x290xf32, #tpu.memory_space<vmem>>, vector<4x256xf32>
    %109 = vector.broadcast %25 : vector<1x256xf32> to vector<4x256xf32>
    %110 = arith.mulf %108, %109 : vector<4x256xf32>
    %111 = arith.addf %107, %110 : vector<4x256xf32>
    %c16_74 = arith.constant 16 : index
    %c17_75 = arith.constant 17 : index
    %112 = vector.load %arg11[%c16_74, %c17_75] : memref<36x290xf32, #tpu.memory_space<vmem>>, vector<4x256xf32>
    %113 = arith.addf %111, %112 : vector<4x256xf32>
    %c20_76 = arith.constant 20 : index
    %c18_77 = arith.constant 18 : index
    %114 = vector.load %arg11[%c20_76, %c18_77] : memref<36x290xf32, #tpu.memory_space<vmem>>, vector<4x256xf32>
    %115 = vector.broadcast %29 : vector<1x256xf32> to vector<4x256xf32>
    %116 = arith.mulf %114, %115 : vector<4x256xf32>
    %117 = arith.addf %113, %116 : vector<4x256xf32>
    %c24_78 = arith.constant 24 : index
    %c32_79 = arith.constant 32 : index
    %118 = vector.load %arg11[%c24_78, %c32_79] : memref<36x290xf32, #tpu.memory_space<vmem>>, vector<4x256xf32>
    %119 = vector.broadcast %25 : vector<1x256xf32> to vector<4x256xf32>
    %120 = arith.mulf %118, %119 : vector<4x256xf32>
    %121 = arith.addf %117, %120 : vector<4x256xf32>
    %c28_80 = arith.constant 28 : index
    %c33_81 = arith.constant 33 : index
    %122 = vector.load %arg11[%c28_80, %c33_81] : memref<36x290xf32, #tpu.memory_space<vmem>>, vector<4x256xf32>
    %123 = arith.addf %121, %122 : vector<4x256xf32>
    %c32_82 = arith.constant 32 : index
    %c34_83 = arith.constant 34 : index
    %124 = vector.load %arg11[%c32_82, %c34_83] : memref<36x290xf32, #tpu.memory_space<vmem>>, vector<4x256xf32>
    %125 = vector.broadcast %29 : vector<1x256xf32> to vector<4x256xf32>
    %126 = arith.mulf %124, %125 : vector<4x256xf32>
    %127 = arith.addf %123, %126 : vector<4x256xf32>
    %128 = arith.addf %82, %127 : vector<4x256xf32>
    %c0_84 = arith.constant 0 : index
    %c0_85 = arith.constant 0 : index
    %129 = vector.load %arg9[%c0_84, %c0_85] : memref<4x256xf32, #tpu.memory_space<vmem>>, vector<4x256xf32>
    tpu.vector_store %arg9[%c0_84, %c0_85], %128 {strides = array<i32>} : memref<4x256xf32, #tpu.memory_space<vmem>>, vector<4x256xf32>,
    %c0_86 = arith.constant 0 : index
    %c0_87 = arith.constant 0 : index
    %130 = vector.load %arg8[%c0_86, %c0_87] : memref<4x256xf32, #tpu.memory_space<vmem>>, vector<4x256xf32>
    %c0_88 = arith.constant 0 : index
    %c0_89 = arith.constant 0 : index
    %131 = vector.load %arg9[%c0_88, %c0_89] : memref<4x256xf32, #tpu.memory_space<vmem>>, vector<4x256xf32>
    %c0_90 = arith.constant 0 : index
    %c0_91 = arith.constant 0 : index
    %132 = vector.load %arg10[%c0_90, %c0_91] : memref<4x256xf32, #tpu.memory_space<vmem>>, vector<4x256xf32>
    %c0_92 = arith.constant 0 : index
    %c4_93 = arith.constant 4 : index
    %c0_94 = arith.constant 0 : index
    %c0_95 = arith.constant 0 : index
    %133 = vector.load %arg4[%c0_92, %c4_93, %c0_94, %c0_95] : memref<1x6x36x4xf32, #tpu.memory_space<vmem>>, vector<1x1x36x4xf32>
    %134 = vector.shape_cast %133 : vector<1x1x36x4xf32> to vector<36x4xf32>
    %c0_96 = arith.constant 0 : index
    %c5 = arith.constant 5 : index
    %c0_97 = arith.constant 0 : index
    %c0_98 = arith.constant 0 : index
    %135 = vector.load %arg4[%c0_96, %c5, %c0_97, %c0_98] : memref<1x6x36x4xf32, #tpu.memory_space<vmem>>, vector<1x1x36x4xf32>
    %136 = vector.shape_cast %135 : vector<1x1x36x4xf32> to vector<36x4xf32>
    %c0_99 = arith.constant 0 : index
    %c2_100 = arith.constant 2 : index
    %c0_101 = arith.constant 0 : index
    %c0_102 = arith.constant 0 : index
    %137 = vector.load %arg5[%c0_99, %c2_100, %c0_101, %c0_102] : memref<1x3x36x4xf32, #tpu.memory_space<vmem>>, vector<1x1x36x4xf32>
    %138 = vector.shape_cast %137 : vector<1x1x36x4xf32> to vector<36x4xf32>
    %cst_103 = arith.constant dense<0.000000e+00> : vector<36x256xf32>
    %139 = tpu.matmul %134, %130, %cst_103 {dimension_numbers = #tpu.dot_dimension_numbers<[1], [0], [0], [1], [0, 0, 1, 1], [], []>} : vector<36x4xf32>, vector<4x256xf32>, vector<36x256xf32> -> vector<36x256xf32>
    %cst_104 = arith.constant dense<0.000000e+00> : vector<36x256xf32>
    %140 = tpu.matmul %136, %131, %cst_104 {dimension_numbers = #tpu.dot_dimension_numbers<[1], [0], [0], [1], [0, 0, 1, 1], [], []>} : vector<36x4xf32>, vector<4x256xf32>, vector<36x256xf32> -> vector<36x256xf32>
    %141 = arith.addf %139, %140 : vector<36x256xf32>
    %cst_105 = arith.constant dense<0.000000e+00> : vector<36x256xf32>
    %142 = tpu.matmul %138, %4, %cst_105 {dimension_numbers = #tpu.dot_dimension_numbers<[1], [0], [0], [1], [0, 0, 1, 1], [], []>} : vector<36x4xf32>, vector<4x256xf32>, vector<36x256xf32> -> vector<36x256xf32>
    %143 = arith.addf %141, %142 : vector<36x256xf32>
    %c0_106 = arith.constant 0 : index
    %c17_107 = arith.constant 17 : index
    %144 = vector.load %arg11[%c0_106, %c17_107] : memref<36x290xf32, #tpu.memory_space<vmem>>, vector<36x256xf32>
    tpu.vector_store %arg11[%c0_106, %c17_107], %143 {strides = array<i32>} : memref<36x290xf32, #tpu.memory_space<vmem>>, vector<36x256xf32>,
    %c0_108 = arith.constant 0 : index
    %c2_109 = arith.constant 2 : index
    %c0_110 = arith.constant 0 : index
    %c0_111 = arith.constant 0 : index
    %145 = vector.load %arg6[%c0_108, %c2_109, %c0_110, %c0_111] : memref<1x3x4x1xf32, #tpu.memory_space<vmem>>, vector<1x1x4x1xf32>
    %146 = vector.shape_cast %145 : vector<1x1x4x1xf32> to vector<4x1xf32>
    %c0_112 = arith.constant 0 : index
    %c0_113 = arith.constant 0 : index
    %147 = vector.load %arg11[%c0_112, %c0_113] : memref<36x290xf32, #tpu.memory_space<vmem>>, vector<4x256xf32>
    %148 = vector.broadcast %25 : vector<1x256xf32> to vector<4x256xf32>
    %149 = arith.mulf %147, %148 : vector<4x256xf32>
    %150 = vector.broadcast %146 : vector<4x1xf32> to vector<4x256xf32>
    %151 = arith.addf %150, %149 : vector<4x256xf32>
    %c4_114 = arith.constant 4 : index
    %c1_115 = arith.constant 1 : index
    %152 = vector.load %arg11[%c4_114, %c1_115] : memref<36x290xf32, #tpu.memory_space<vmem>>, vector<4x256xf32>
    %153 = arith.addf %151, %152 : vector<4x256xf32>
    %c8_116 = arith.constant 8 : index
    %c2_117 = arith.constant 2 : index
    %154 = vector.load %arg11[%c8_116, %c2_117] : memref<36x290xf32, #tpu.memory_space<vmem>>, vector<4x256xf32>
    %155 = vector.broadcast %29 : vector<1x256xf32> to vector<4x256xf32>
    %156 = arith.mulf %154, %155 : vector<4x256xf32>
    %157 = arith.addf %153, %156 : vector<4x256xf32>
    %c12_118 = arith.constant 12 : index
    %c16_119 = arith.constant 16 : index
    %158 = vector.load %arg11[%c12_118, %c16_119] : memref<36x290xf32, #tpu.memory_space<vmem>>, vector<4x256xf32>
    %159 = vector.broadcast %25 : vector<1x256xf32> to vector<4x256xf32>
    %160 = arith.mulf %158, %159 : vector<4x256xf32>
    %161 = arith.addf %157, %160 : vector<4x256xf32>
    %c16_120 = arith.constant 16 : index
    %c17_121 = arith.constant 17 : index
    %162 = vector.load %arg11[%c16_120, %c17_121] : memref<36x290xf32, #tpu.memory_space<vmem>>, vector<4x256xf32>
    %163 = arith.addf %161, %162 : vector<4x256xf32>
    %c20_122 = arith.constant 20 : index
    %c18_123 = arith.constant 18 : index
    %164 = vector.load %arg11[%c20_122, %c18_123] : memref<36x290xf32, #tpu.memory_space<vmem>>, vector<4x256xf32>
    %165 = vector.broadcast %29 : vector<1x256xf32> to vector<4x256xf32>
    %166 = arith.mulf %164, %165 : vector<4x256xf32>
    %167 = arith.addf %163, %166 : vector<4x256xf32>
    %c24_124 = arith.constant 24 : index
    %c32_125 = arith.constant 32 : index
    %168 = vector.load %arg11[%c24_124, %c32_125] : memref<36x290xf32, #tpu.memory_space<vmem>>, vector<4x256xf32>
    %169 = vector.broadcast %25 : vector<1x256xf32> to vector<4x256xf32>
    %170 = arith.mulf %168, %169 : vector<4x256xf32>
    %171 = arith.addf %167, %170 : vector<4x256xf32>
    %c28_126 = arith.constant 28 : index
    %c33_127 = arith.constant 33 : index
    %172 = vector.load %arg11[%c28_126, %c33_127] : memref<36x290xf32, #tpu.memory_space<vmem>>, vector<4x256xf32>
    %173 = arith.addf %171, %172 : vector<4x256xf32>
    %c32_128 = arith.constant 32 : index
    %c34_129 = arith.constant 34 : index
    %174 = vector.load %arg11[%c32_128, %c34_129] : memref<36x290xf32, #tpu.memory_space<vmem>>, vector<4x256xf32>
    %175 = vector.broadcast %29 : vector<1x256xf32> to vector<4x256xf32>
    %176 = arith.mulf %174, %175 : vector<4x256xf32>
    %177 = arith.addf %173, %176 : vector<4x256xf32>
    %178 = arith.addf %132, %177 : vector<4x256xf32>
    %c0_130 = arith.constant 0 : index
    %c0_131 = arith.constant 0 : index
    %179 = vector.load %arg10[%c0_130, %c0_131] : memref<4x256xf32, #tpu.memory_space<vmem>>, vector<4x256xf32>
    tpu.vector_store %arg10[%c0_130, %c0_131], %178 {strides = array<i32>} : memref<4x256xf32, #tpu.memory_space<vmem>>, vector<4x256xf32>,
    %c19_i32 = arith.constant 19 : i32
    %180 = arith.cmpi eq, %arg1, %c19_i32 : i32
    %181 = arith.extui %180 : i1 to i32
    %c0_i32_132 = arith.constant 0 : i32
    %182 = arith.cmpi ne, %181, %c0_i32_132 : i32
    scf.if %182 {
      %c0_133 = arith.constant 0 : index
      %c0_134 = arith.constant 0 : index
      %183 = vector.load %arg8[%c0_133, %c0_134] : memref<4x256xf32, #tpu.memory_space<vmem>>, vector<4x256xf32>
      %c0_135 = arith.constant 0 : index
      %c0_136 = arith.constant 0 : index
      %c0_137 = arith.constant 0 : index
      %184 = vector.load %arg7[%c0_135, %c0_136, %c0_137] : memref<1x12x256xf32, #tpu.memory_space<vmem>>, vector<1x4x256xf32>
      %185 = vector.shape_cast %184 : vector<1x4x256xf32> to vector<4x256xf32>
      %186 = vector.shape_cast %183 : vector<4x256xf32> to vector<1x4x256xf32>
      tpu.vector_store %arg7[%c0_135, %c0_136, %c0_137], %186 {strides = array<i32>} : memref<1x12x256xf32, #tpu.memory_space<vmem>>, vector<1x4x256xf32>,
      %c0_138 = arith.constant 0 : index
      %c0_139 = arith.constant 0 : index
      %187 = vector.load %arg9[%c0_138, %c0_139] : memref<4x256xf32, #tpu.memory_space<vmem>>, vector<4x256xf32>
      %c0_140 = arith.constant 0 : index
      %c4_141 = arith.constant 4 : index
      %c0_142 = arith.constant 0 : index
      %188 = vector.load %arg7[%c0_140, %c4_141, %c0_142] : memref<1x12x256xf32, #tpu.memory_space<vmem>>, vector<1x4x256xf32>
      %189 = vector.shape_cast %188 : vector<1x4x256xf32> to vector<4x256xf32>
      %190 = vector.shape_cast %187 : vector<4x256xf32> to vector<1x4x256xf32>
      tpu.vector_store %arg7[%c0_140, %c4_141, %c0_142], %190 {strides = array<i32>} : memref<1x12x256xf32, #tpu.memory_space<vmem>>, vector<1x4x256xf32>,
      %c0_143 = arith.constant 0 : index
      %c0_144 = arith.constant 0 : index
      %191 = vector.load %arg10[%c0_143, %c0_144] : memref<4x256xf32, #tpu.memory_space<vmem>>, vector<4x256xf32>
      %c0_145 = arith.constant 0 : index
      %c8_146 = arith.constant 8 : index
      %c0_147 = arith.constant 0 : index
      %192 = vector.load %arg7[%c0_145, %c8_146, %c0_147] : memref<1x12x256xf32, #tpu.memory_space<vmem>>, vector<1x4x256xf32>
      %193 = vector.shape_cast %192 : vector<1x4x256xf32> to vector<4x256xf32>
      %194 = vector.shape_cast %191 : vector<4x256xf32> to vector<1x4x256xf32>
      tpu.vector_store %arg7[%c0_145, %c8_146, %c0_147], %194 {strides = array<i32>} : memref<1x12x256xf32, #tpu.memory_space<vmem>>, vector<1x4x256xf32>,
    } else {
    }
    return
  }
  func.func @transform_0(%arg0: i32, %arg1: i32) -> (i32, i32, i32) {
    %c0_i32 = arith.constant 0 : i32
    %c0_i32_0 = arith.constant 0 : i32
    %c0_i32_1 = arith.constant 0 : i32
    return %arg0, %c0_i32, %c0_i32_0 : i32, i32, i32
  }
  func.func @transform_1(%arg0: i32, %arg1: i32) -> (i32, i32, i32) {
    %c0_i32 = arith.constant 0 : i32
    %c0_i32_0 = arith.constant 0 : i32
    %c0_i32_1 = arith.constant 0 : i32
    return %arg0, %c0_i32, %c0_i32_0 : i32, i32, i32
  }
  func.func @transform_2(%arg0: i32, %arg1: i32) -> (i32, i32, i32, i32) {
    %c0_i32 = arith.constant 0 : i32
    %c0_i32_0 = arith.constant 0 : i32
    %c0_i32_1 = arith.constant 0 : i32
    %c0_i32_2 = arith.constant 0 : i32
    return %arg1, %c0_i32, %c0_i32_0, %c0_i32_1 : i32, i32, i32, i32
  }
  func.func @transform_3(%arg0: i32, %arg1: i32) -> (i32, i32, i32, i32) {
    %c0_i32 = arith.constant 0 : i32
    %c0_i32_0 = arith.constant 0 : i32
    %c0_i32_1 = arith.constant 0 : i32
    %c0_i32_2 = arith.constant 0 : i32
    return %arg1, %c0_i32, %c0_i32_0, %c0_i32_1 : i32, i32, i32, i32
  }
  func.func @transform_4(%arg0: i32, %arg1: i32) -> (i32, i32, i32, i32) {
    %c0_i32 = arith.constant 0 : i32
    %c0_i32_0 = arith.constant 0 : i32
    %c0_i32_1 = arith.constant 0 : i32
    %c0_i32_2 = arith.constant 0 : i32
    return %arg1, %c0_i32, %c0_i32_0, %c0_i32_1 : i32, i32, i32, i32
  }
  func.func @transform_5(%arg0: i32, %arg1: i32) -> (i32, i32, i32) {
    %c0_i32 = arith.constant 0 : i32
    %c0_i32_0 = arith.constant 0 : i32
    %c0_i32_1 = arith.constant 0 : i32
    return %arg0, %c0_i32, %c0_i32_0 : i32, i32, i32
  }
}

</mosaic_0001>

<bundles_post_ra>
// kernel: imm_irm_apply.1
= control target key start
LH: loop header
LB: loop body
LE: loop exit
PB: predicated region body
PF: predicated region fallthrough
CT: control target
= control target key end

     0   :  { %s2599_s18 = smov 0   ;;  %s2601_s19 = smov 0   ;;  %s3180_s0 = inlined_call_operand.vmem [shape: f32[2,12,256], index: 0, kind: input, shape index: {}]   ;;  %s3181_s1 = inlined_call_operand.vmem [shape: f32[2,4,256], index: 1, kind: input, shape index: {}]   ;;  %s3182_s2 = inlined_call_operand.vmem [shape: f32[20,6,36,4], index: 2, kind: input, shape index: {}]   ;;  %s3183_s3 = inlined_call_operand.vmem [shape: f32[20,3,36,4], index: 3, kind: input, shape index: {}]   ;;  %s3184_s4 = inlined_call_operand.vmem [shape: f32[20,3,4,1], index: 4, kind: input, shape index: {}]   ;;  %s3185_s5 = inlined_call_operand.vmem [shape: f32[2,12,256], index: 5, kind: output, shape index: {}]  }
   0x1   :  { %s2603_s20 = smov 0   ;;  %s2605_s21 = smov 0  }
   0x2   :  { %s2607_s22 = smov 0  }
   0x3 LB: > { %s24_s23 = sadd.s32 1, %s2542_s20  ;;  %s27_s24 = sadd.s32 1, %s2546_s21  ;;  %s2550_s22 = sphi %s2607_s22, %s15_s22   ;;  %s2546_s21 = sphi %s2605_s21, %s3189_s21   ;;  %s2542_s20 = sphi %s2603_s20, %s3188_s20   ;;  %s2538_s19 = sphi %s2601_s19, %s3187_s19   ;;  %s2534_s18 = sphi %s2599_s18, %s3186_s18  }
   0x4   : > { %p25_p0 = scmp.ge.s32.totalorder %s24_s23, 20  ;;  %p2257_p1 = scmp.ge.s32.totalorder %s2550_s22, 1 }
   0x5   : > { %p239_p2 = scmp.lt.s32.totalorder %s2550_s22, 41 }
   0x6   : > { %s3191_s23 = smov (%p25_p0, %s24_s23), 0  ;;  %s3193_s24 = smov (!%p25_p0, %s27_s24), %s2546_s21 }
   0x7   : > { %p240_p3 = pnand %p2257_p1, %p239_p2  ;;  %p29_p4 = scmp.ge.s32.totalorder %s3193_s24, 2 }
   0x8   : > { %p287_p5 = scmp.lt.s32.totalorder (!%p240_p3), %s2538_s19, 1  ;;  %p297_p6 = scmp.lt.s32.totalorder (!%p240_p3), %s2534_s18, 19 }
   0x9   : > { %s3195_s24 = smov (%p29_p4, %s3193_s24), 0  ;;  %243 = sbr.rel (%p240_p3) target bundleno = 1502 (0x5de), region = 40 }
   0xa   : > { %p2267_p7 = scmp.ne.s32.totalorder (!%p240_p3), %s2534_s18, 0 }
   0xe   : > { %s3197_s19 = smov (!%p287_p5, %s2538_s19), 1 }
   0xf   : > { %s298_s25 = scalar_select %p297_p6, %s2534_s18, 19 }
  0x10   : > { %s2420_s26 = sshll.u32 %s3197_s19, 5  ;;  %s2421_s27 = sshll.u32 %s3197_s19, 3 }
  0x11   : > { %s2636_s30 = scalar_lea.vmem %s3180_s0, %s2420_s26  ;;  %s2641_s8 = scalar_lea.vmem %s3181_s1, %s2421_s27 }
  0x12   : > { %s2425_s9 = smul.u32 240, %s298_s25  ;;  %s2646_s12 = scalar_lea.vmem %s3185_s5, %s2420_s26 }
  0x13   : > { %s2426_s13 = smul.u32 120, %s298_s25 }
  0x14   : > { %s2651_s16 = scalar_lea.vmem %s3182_s2, %s2425_s9  ;;  %s2427_s17 = smul.u32 12, %s298_s25 }
  0x15   : > { %s2656_s29 = scalar_lea.vmem %s3183_s3, %s2426_s13  ;;  %320 = sbr.rel (%p2267_p7) target bundleno = 47 (0x2f), region = 44 }
  0x16   : > { %s2661_s7 = scalar_lea.vmem %s3184_s4, %s2427_s17 }
  0x1a   : > { %v347_v0 = vld [vmem:[%s2636_s30] sm:$0xf0]  ;;  %v348_v1 = vld [vmem:[%s2636_s30 + $0x8] sm:$0xf0]  ;;  %v2552_v2 = vmov 0.0   ;;  %vm323_vm0 = vcmask 277504  }
  0x1b   : > { %351 = vst.sshfl [vmem:[#allocation1] sm:$0xff pattern:$0x75316420] %v347_v0  ;;  %v339_v3 = vld [vmem:[%s2636_s30 + $0x8] sm:$0xf]  ;;  %vm343_vm1 = vcmask 1043456  }
  0x1c   : > { %352 = vst.sshfl [vmem:[#allocation1 + $0x8] sm:$0xff pattern:$0x75316420] %v348_v1  ;;  %v358_v4 = vld [vmem:[%s2636_s30 + $0x18] sm:$0xf]  ;;  %v342_v5 = vrot.slane %v339_v3, 4 }
  0x1d   : > { %321 = vst [vmem:[#allocation5] sm:$0xff] %v2552_v2  ;;  %v338_v6 = vld [vmem:[%s2636_s30] sm:$0xf]  ;;  %v361_v7 = vrot.slane %v358_v4, 4  ;;  %vm336_vm2 = vcmask 273408  }
  0x1e   : > { %322 = vst [vmem:[#allocation5 + $0x8] sm:$0xff] %v2552_v2  ;;  %v357_v8 = vld [vmem:[%s2636_s30 + $0x10] sm:$0xf]  ;;  %v344_v9 = vsel %vm343_vm1, %v338_v6, %v342_v5 }
  0x1f   : > { %325 = vst [vmem:[#allocation5 + $0x18] sm:$0xff] %v2552_v2  ;;  %v362_v11 = vsel %vm343_vm1, %v357_v8, %v361_v7 }
  0x20   : > { %326 = vst [vmem:[#allocation5 + $0x20] sm:$0xff] %v2552_v2 }
  0x21   : > { %328 = vst [vmem:[#allocation5 + $0x30] sm:$0xff] %v2552_v2 }
  0x22   : > { %329 = vst [vmem:[#allocation5 + $0x38] sm:$0xff] %v2552_v2 }
  0x23   : > { %331 = vst [vmem:[#allocation5 + $0x48] sm:$0xff] %v2552_v2  ;;  %v354_v10 = vld [vmem:[#allocation1 + $0x1] ss:$2 sm:$0xff] }
  0x24   : > { %332 = vst [vmem:[#allocation5 + $0x50] sm:$0xff] %v2552_v2 }
  0x25   : > { %334 = vst [vmem:[#allocation5 + $0x60] sm:$0xf] %v2552_v2 }
  0x26   : > { %335 = vst [vmem:[#allocation5 + $0x68] sm:$0xf] %v2552_v2 }
  0x27   : > { %324 = vst.msk [vmem:[#allocation5 + $0x10] sm:$0xff] %vm323_vm0, %v2552_v2 }
  0x28   : > { %327 = vst.msk [vmem:[#allocation5 + $0x28] sm:$0xff] %vm323_vm0, %v2552_v2 }
  0x29   : > { %330 = vst.msk [vmem:[#allocation5 + $0x40] sm:$0xff] %vm323_vm0, %v2552_v2 }
  0x2a   : > { %333 = vst.msk [vmem:[#allocation5 + $0x58] sm:$0xff] %vm323_vm0, %v2552_v2 }
  0x2b   : > { %337 = vst.msk [vmem:[#allocation5 + $0x70] sm:$0xf] %vm336_vm2, %v2552_v2 }
  0x2c   : > { %346 = vst [vmem:[#allocation2] sm:$0xff] %v344_v9 }
  0x2d   : > { %356 = vst [vmem:[#allocation3] sm:$0xff] %v354_v10 }
  0x2e   : > { %364 = vst [vmem:[#allocation4] sm:$0xff] %v362_v11 }
  0x2f PF: > { %vm444_vm3 = vcmask 1043456   ;;  %v2272_v14 = vld [vmem:[%s2651_s16 + $0x28] sm:$0xff]  ;;  %vm428_vm4 = vcmask 31744   ;;  %v2275_v15 = vld [vmem:[%s2651_s16 + $0x40] sm:$0xff]  ;;  %v2273_v19 = vld [vmem:[%s2651_s16 + $0x30] sm:$0xff]  ;;  %v366_v36 = vlaneseq  ;;  %v2553_v41 = vmov 0.0  }
  0x30   : > { %v2681_v18 = vld [vmem:[%s2641_s8] sm:$0xff]  ;;  %v2276_v20 = vld [vmem:[%s2651_s16 + $0x48] sm:$0xf]  ;;  %v2274_v23 = vld [vmem:[%s2651_s16 + $0x38] sm:$0xff]  ;;  %s2554_s25 = smov 16   ;;  %s2555_s26 = smov 18  }
  0x31   : > { %v408_v24 = vld [vmem:[%s2651_s16] sm:$0xff]  ;;  %v409_v27 = vld [vmem:[%s2651_s16 + $0x8] sm:$0xff]  ;;  %v410_v29 = vld [vmem:[%s2651_s16 + $0x10] sm:$0xff]  ;;  %v367_v37 = vand.u32 127, %v366_v36  ;;  %v2556_v49 = vmov 0   ;;  %s2557_s30 = smov 2  }
  0x32   : > { %v419_v28 = vld [vmem:[%s2656_s29] sm:$0xff]  ;;  %v420_v30 = vld [vmem:[%s2656_s29 + $0x8] sm:$0xff]  ;;  %v411_v31 = vld [vmem:[%s2651_s16 + $0x18] sm:$0xff]  ;;  %2510 = vset.pattern.permute.xlu0 %v2556_v49  ;;  %2511 = vset.pattern.permute.xlu2 %v2556_v49  ;;  %s2558_s8 = smov 32   ;;  %s2559_s9 = smov 34   ;;  %vm748_vm9 = vcmask 1047688  }
  0x33   : > { %v421_v32 = vld [vmem:[%s2656_s29 + $0x10] sm:$0xff]  ;;  %v412_v33 = vld [vmem:[%s2651_s16 + $0x20] sm:$0xf]  ;;  %v422_v34 = vld [vmem:[%s2656_s29 + $0x18] sm:$0xff]  ;;  %v368_v38 = vadd.s32 128, %v367_v37  ;;  %v373_v39 = vand.u32 15, %v367_v37 }
  0x34   : > { %v405_v13 = vld [vmem:[#allocation3] sm:$0xff]  ;;  %v423_v35 = vld [vmem:[%s2656_s29 + $0x20] sm:$0xf]  ;;  %s2560_s10 = smov 17   ;;  %vm727_vm10 = vcmask 138240   ;;  %vm764_vm11 = vcmask 134144  }
  0x35   : > { %v406_v12 = vld [vmem:[#allocation4] sm:$0xff]  ;;  %v380_v40 = vand.u32 15, %v368_v38  ;;  %vm393_vm5 = vcmp.ne.s32.totalorder %v373_v39, 0  ;;  %vm399_vm7 = vcmp.ne.s32.totalorder %v373_v39, 15  ;;  %v766_v48 = vld [vmem:[%s2661_s7] sm:$0xf] }
  0x36   : > { %425 = vst [vmem:[#allocation1] ss:$2 sm:$0xff] %v406_v12  ;;  %v2727_v42 = vsel %vm393_vm5, 1.0, %v2553_v41  ;;  %v2270_v45 = vsel %vm399_vm7, 1.0, %v2553_v41  ;;  %s2561_s11 = smov 127   ;;  %vm809_vm12 = vcmask 15360  }
  0x37   : > { %vm394_vm6 = vcmp.ne.s32.totalorder %v380_v40, 0  ;;  %vm400_vm8 = vcmp.ne.s32.totalorder %v380_v40, 15  ;;  %vm842_vm13 = vcmask 130048   ;;  %s2562_s13 = smov 126   ;;  %vm761_vm14 = vcmask 1043592   ;;  %s2563_s14 = smov 112  }
  0x38   : > { %v2729_v43 = vsel %vm394_vm6, 1.0, %v2553_v41  ;;  %v2271_v46 = vsel %vm400_vm8, 1.0, %v2553_v41  ;;  %vm895_vm15 = vcmask 146432   ;;  %s2564_s15 = smov 111   ;;  %s2565_s17 = smov 110   ;;  %vm929_vm0 = vcmask 261120  }
  0x39   : > { %v2490_v44 = vpack.i.bf16 %v2729_v43, %v2727_v42  ;;  %v2495_v47 = vpack.i.bf16 %v2271_v46, %v2270_v45  ;;  %s2566_s19 = smov 96   ;;  %s2567_s28 = smov 95   ;;  %vm982_vm1 = vcmask 277504   ;;  %vm793_vm2 = vcmask 1039360  }
  0x3a   : > { %s2568_s27 = smov 94   ;;  %vm826_vm5 = vcmask 1031168   ;;  %vm862_vm6 = vcmask 916480   ;;  %vm881_vm7 = vcmask 908288   ;;  %vm915_vm8 = vcmask 900096   ;;  %p2417_p8 = scmp.ne.s32.totalorder %s2534_s18, 19 }
  0x3b   : > { %2491 = vrot.lane.b32.xlu0 %v2490_v44, %s2554_s25  ;;  %2486 = vrot.lane.b32.xlu2 %v2495_v47, %s2557_s30 }
  0x3c   : > { %2501 = vrot.lane.b32.xlu1 %v2490_v44, %s2558_s8 }
  0x3d   : > { %v426_v16 = vld.sshfl [vmem:[#allocation1] sm:$0xff pattern:$0x75316420]  ;;  %v427_v17 = vld.sshfl [vmem:[#allocation1 + $0x8] sm:$0xff pattern:$0x75316420] }
  0x3e   : > { %2277 = vmatpush.msk.msra.mxu0 %vm444_vm3, %v426_v16  ;;  %2423 = vmatpush.msk.msra.mxu2 %vm444_vm3, %v426_v16  ;;  %514 = vst [vmem:[#allocation1] ss:$2 sm:$0xff] %v405_v13 }
  0x3f   : > { %2283 = vmatpush.msk.msra.mxu1 %vm444_vm3, %v427_v17  ;;  %2424 = vmatpush.msk.msra.mxu3 %vm444_vm3, %v427_v17 }
  0x40   : > { %2278 = vmatmul.msk.f32.vlgmr.msra.gmra.mxu0 %vm428_vm4, %v2272_v14  ;;  %2281 = vmatmul.msk.f32.vlgmr.msra.gmra.mxu2 %vm428_vm4, %v2275_v15 }
  0x41   : > { %2284 = vmatmul.msk.f32.vlgmr.msra.gmra.mxu1 %vm428_vm4, %v2272_v14  ;;  %2287 = vmatmul.msk.f32.vlgmr.msra.gmra.mxu3 %vm428_vm4, %v2275_v15 }
  0x43   : > { %2496 = vrot.lane.b32.xlu0 %v2495_v47, %s2555_s26  ;;  %2506 = vrot.lane.b32.xlu2 %v2495_v47, %s2559_s9 }
  0x45   : > { %v515_v21 = vld.sshfl [vmem:[#allocation1] sm:$0xff pattern:$0x75316420]  ;;  %v516_v22 = vld.sshfl [vmem:[#allocation1 + $0x8] sm:$0xff pattern:$0x75316420] }
  0x46   : > { %2289 = vmatpush.msk.msrb.mxu2 %vm444_vm3, %v515_v21  ;;  %2295 = vmatpush.msk.msrb.mxu3 %vm444_vm3, %v516_v22  ;;  %601 = vst [vmem:[#allocation1] ss:$2 sm:$0xff] %v2681_v18 }
  0x48   : > { %2279 = vmatmul.msk.f32.gmra.mxu0 %vm428_vm4, %v2273_v19  ;;  %2282 = vmatmul.msk.f32.gmra.mxu2 %vm428_vm4, %v2276_v20 }
  0x49   : > { %2285 = vmatmul.msk.f32.gmra.mxu1 %vm428_vm4, %v2273_v19  ;;  %2288 = vmatmul.msk.f32.gmra.mxu3 %vm428_vm4, %v2276_v20 }
  0x4b   : > { %773 = vperm.xlu0 %2510, %v766_v48  }
  0x4d   : > { %v602_v25 = vld.sshfl [vmem:[#allocation1] sm:$0xff pattern:$0x75316420]  ;;  %v603_v26 = vld.sshfl [vmem:[#allocation1 + $0x8] sm:$0xff pattern:$0x75316420] }
  0x4e   : > { %2301 = vmatpush.msk.msrb.mxu0 %vm444_vm3, %v602_v25  ;;  %2307 = vmatpush.msk.msrb.mxu1 %vm444_vm3, %v603_v26  ;;  %1035 = vst [vmem:[#allocation1] ss:$2 sm:$0xff] %v406_v12 }
  0x50   : > { %2280 = vmatmul.msk.f32.gmra.mxu0 %vm428_vm4, %v2274_v23  ;;  %2290 = vmatmul.msk.f32.vlgmr.msrb.gmra.mxu2 %vm428_vm4, %v408_v24 }
  0x51   : > { %2286 = vmatmul.msk.f32.gmra.mxu1 %vm428_vm4, %v2274_v23  ;;  %2296 = vmatmul.msk.f32.vlgmr.msrb.gmra.mxu3 %vm428_vm4, %v408_v24 }
  0x58   : > { %2291 = vmatmul.msk.f32.gmra.mxu2 %vm428_vm4, %v409_v27  ;;  %2302 = vmatmul.msk.f32.vlgmr.msrb.gmra.mxu0 %vm428_vm4, %v419_v28 }
  0x59   : > { %2297 = vmatmul.msk.f32.gmra.mxu3 %vm428_vm4, %v409_v27  ;;  %2308 = vmatmul.msk.f32.vlgmr.msrb.gmra.mxu1 %vm428_vm4, %v419_v28 }
  0x60   : > { %2292 = vmatmul.msk.f32.gmra.mxu2 %vm428_vm4, %v410_v29  ;;  %2303 = vmatmul.msk.f32.gmra.mxu0 %vm428_vm4, %v420_v30 }
  0x61   : > { %2298 = vmatmul.msk.f32.gmra.mxu3 %vm428_vm4, %v410_v29  ;;  %2309 = vmatmul.msk.f32.gmra.mxu1 %vm428_vm4, %v420_v30 }
  0x68   : > { %2293 = vmatmul.msk.f32.gmra.mxu2 %vm428_vm4, %v411_v31  ;;  %2304 = vmatmul.msk.f32.gmra.mxu0 %vm428_vm4, %v421_v32 }
  0x69   : > { %2299 = vmatmul.msk.f32.gmra.mxu3 %vm428_vm4, %v411_v31  ;;  %2310 = vmatmul.msk.f32.gmra.mxu1 %vm428_vm4, %v421_v32 }
  0x70   : > { %2294 = vmatmul.msk.f32.gmra.mxu2 %vm428_vm4, %v412_v33  ;;  %2305 = vmatmul.msk.f32.gmra.mxu0 %vm428_vm4, %v422_v34 }
  0x71   : > { %2300 = vmatmul.msk.f32.gmra.mxu3 %vm428_vm4, %v412_v33  ;;  %2311 = vmatmul.msk.f32.gmra.mxu1 %vm428_vm4, %v422_v34 }
  0x78   : > { %2306 = vmatmul.msk.f32.gmra.mxu0 %vm428_vm4, %v423_v35 }
  0x79   : > { %2312 = vmatmul.msk.f32.gmra.mxu1 %vm428_vm4, %v423_v35 }
  0x95   : > { %v2487_v38 = vpop.permute.xlu2 %2486 }
  0x9d   : > { %v2746_v40 = vpop.permute.xlu2 %2506 }
  0xad   : > { %v2492_v37 = vpop.permute.xlu0 %2491 }
  0xae   : > { %v2751_v45 = vpop.permute.xlu1 %2501 }
  0xb5   : > { %v2744_v39 = vpop.permute.xlu0 %2496 }
  0xbd   : > { %v466_v50 = vpop.f32.mrf.mxu0  ;;  %v2748_v41 = vpop.permute.xlu0 %773 }
  0xbe   : > { %v498_v51 = vpop.f32.mrf.mxu1 }
  0xc3   : > { %v475_v52 = vpop.f32.mrf.mxu2 }
  0xc4   : > { %v507_v53 = vpop.f32.mrf.mxu3 }
  0xc5   : > { %v469_v54 = vpop.f32.mrf.mxu0 }
  0xc6   : > { %v501_v55 = vpop.f32.mrf.mxu1 }
  0xcb   : > { %v478_v56 = vpop.f32.mrf.mxu2 }
  0xcc   : > { %v510_v57 = vpop.f32.mrf.mxu3 }
  0xcd   : > { %v472_v58 = vpop.f32.mrf.mxu0 }
  0xce   : > { %v504_v59 = vpop.f32.mrf.mxu1 }
  0xd3   : > { %v553_v60 = vpop.f32.mrf.mxu2 }
  0xd4   : > { %v554_v61 = vadd.f32 %v553_v60, %v466_v50  ;;  %v585_v62 = vpop.f32.mrf.mxu3 }
  0xd5   : > { %v640_v63 = vpop.f32.mrf.mxu0  ;;  %v586_v2 = vadd.f32 %v585_v62, %v498_v51  ;;  %v2767_v62 = vunpack.i.l.bf16 %v2487_v38 }
  0xd6   : > { %v687_v0 = vadd.f32 %v640_v63, %v554_v61  ;;  %v672_v1 = vpop.f32.mrf.mxu1  ;;  %v2765_v61 = vunpack.i.h.bf16 %v2487_v38 }
  0xd7   : > { %v688_v7 = vadd.f32 %v672_v1, %v586_v2  ;;  %v2769_v2 = vunpack.i.h.bf16 %v2492_v37 }
  0xd8   : > { %707 = vrot.lane.b32.xlu0 %v687_v0, %s2560_s10 }
  0xdb   : > { %v556_v3 = vpop.f32.mrf.mxu2 }
  0xdc   : > { %v557_v4 = vadd.f32 %v556_v3, %v469_v54  ;;  %v588_v5 = vpop.f32.mrf.mxu3  ;;  %v2771_v3 = vunpack.i.l.bf16 %v2492_v37 }
  0xdd   : > { %v643_v6 = vpop.f32.mrf.mxu0  ;;  %v589_v10 = vadd.f32 %v588_v5, %v501_v55 }
  0xde   : > { %v689_v8 = vadd.f32 %v643_v6, %v557_v4  ;;  %v675_v9 = vpop.f32.mrf.mxu1 }
  0xdf   : > { %v690_v15 = vadd.f32 %v675_v9, %v589_v10 }
  0xe0   : > { %709 = vrot.lane.b32.xlu0 %v688_v7, %s2560_s10  ;;  %711 = vrot.lane.b32.xlu1 %v689_v8, %s2560_s10  ;;  %v2777_v7 = vsel %vm809_vm12, %v2767_v62, %v2765_v61  ;;  %vm946_vm12 = vcmask 785408  }
  0xe3   : > { %v559_v11 = vpop.f32.mrf.mxu2 }
  0xe4   : > { %v560_v12 = vadd.f32 %v559_v11, %v472_v58  ;;  %v591_v13 = vpop.f32.mrf.mxu3 }
  0xe5   : > { %v646_v14 = vpop.f32.mrf.mxu0  ;;  %v592_v19 = vadd.f32 %v591_v13, %v504_v59 }
  0xe6   : > { %v691_v16 = vadd.f32 %v646_v14, %v560_v12  ;;  %v678_v17 = vpop.f32.mrf.mxu1 }
  0xe7   : > { %v692_v25 = vadd.f32 %v678_v17, %v592_v19 }
  0xe8   : > { %713 = vrot.lane.b32.xlu1 %v690_v15, %s2560_s10  ;;  %715 = vrot.lane.b32.xlu2 %v691_v16, %s2560_s10  ;;  %v2789_v15 = vsel %vm842_vm13, %v2771_v3, %v2769_v2  ;;  %vm968_vm13 = vcmask 777216  }
  0xeb   : > { %v562_v20 = vpop.f32.mrf.mxu2 }
  0xec   : > { %v563_v21 = vadd.f32 %v562_v20, %v475_v52  ;;  %v594_v22 = vpop.f32.mrf.mxu3 }
  0xed   : > { %v595_v23 = vadd.f32 %v594_v22, %v507_v53  ;;  %v649_v24 = vpop.f32.mrf.mxu0 }
  0xee   : > { %v693_v26 = vadd.f32 %v649_v24, %v563_v21  ;;  %v681_v27 = vpop.f32.mrf.mxu1  ;;  %v2799_v24 = vunpack.i.h.bf16 %v2744_v39 }
  0xef   : > { %v694_v28 = vadd.f32 %v681_v27, %v595_v23 }
  0xf0   : > { %717 = vrot.lane.b32.xlu2 %v692_v25, %s2560_s10  ;;  %719 = vrot.lane.b32.xlu0 %v693_v26, %s2560_s10  ;;  %v2802_v25 = vunpack.i.l.bf16 %v2744_v39  ;;  %v2818_v39 = vunpack.i.h.bf16 %v2751_v45 }
  0xf1   : > { %721 = vrot.lane.b32.xlu1 %v694_v28, %s2560_s10 }
  0xf3   : > { %v565_v29 = vpop.f32.mrf.mxu2 }
  0xf4   : > { %v566_v30 = vadd.f32 %v565_v29, %v478_v56  ;;  %v597_v31 = vpop.f32.mrf.mxu3 }
  0xf5   : > { %v598_v32 = vadd.f32 %v597_v31, %v510_v57  ;;  %v652_v33 = vpop.f32.mrf.mxu0 }
  0xf6   : > { %v695_v34 = vadd.f32 %v652_v33, %v566_v30  ;;  %v684_v35 = vpop.f32.mrf.mxu1  ;;  %v2810_v33 = vsel %vm895_vm15, %v2802_v25, %v2799_v24  ;;  %vm999_vm15 = vcmask 769024  }
  0xf7   : > { %v696_v36 = vadd.f32 %v684_v35, %v598_v32 }
  0xf9   : > { %725 = vrot.lane.b32.xlu2 %v696_v36, %s2560_s10  ;;  %723 = vrot.lane.b32.xlu1 %v695_v34, %s2560_s10 }
 0x142   : > { %v716_v44 = vpop.permute.xlu2 %715 }
 0x143   : > { %755 = vst.msk [vmem:[#allocation5 + $0x30] sm:$0xff] %vm748_vm9, %v716_v44 }
 0x14a   : > { %v708_v46 = vpop.permute.xlu0 %707  ;;  %v718_v47 = vpop.permute.xlu2 %717  ;;  %v869_v27 = vld [vmem:[#allocation5 + $0x30] sm:$0xf]  ;;  %v888_v31 = vld [vmem:[#allocation5 + $0x30] sm:$0xf0] }
 0x14b   : > { %749 = vst.msk [vmem:[#allocation5] sm:$0xff] %vm748_vm9, %v708_v46  ;;  %v730_v48 = vsel %vm727_vm10, %v716_v44, %v718_v47  ;;  %v900_v35 = vmul.f32 %v2802_v25, %v888_v31  ;;  %v2821_v44 = vunpack.i.l.bf16 %v2751_v45 }
 0x14c   : > { %756 = vst [vmem:[#allocation5 + $0x38] sm:$0xff] %v730_v48 }
 0x14d   : > { %757 = vst.msk [vmem:[#allocation5 + $0x40] sm:$0xff] %vm727_vm10, %v718_v47  ;;  %v906_v38 = vrot.slane %v900_v35, 4 }
 0x152   : > { %v710_v49 = vpop.permute.xlu0 %709  ;;  %v712_v50 = vpop.permute.xlu1 %711  ;;  %v778_v51 = vld [vmem:[#allocation5] sm:$0xf0]  ;;  %v767_v35 = vld [vmem:[#allocation5] sm:$0xf] }
 0x153   : > { %v728_v52 = vsel %vm727_vm10, %v708_v46, %v710_v49  ;;  %751 = vst.msk [vmem:[#allocation5 + $0x10] sm:$0xff] %vm727_vm10, %v710_v49  ;;  %v726_v53 = vpop.permute.xlu2 %725  ;;  %v784_v54 = vrot.slane %v778_v51, 4  ;;  %v870_v29 = vld [vmem:[#allocation5 + $0x38] sm:$0xf]  ;;  %v889_v30 = vld [vmem:[#allocation5 + $0x38] sm:$0xf0] }
 0x154   : > { %750 = vst [vmem:[#allocation5 + $0x8] sm:$0xff] %v728_v52  ;;  %v871_v26 = vld [vmem:[#allocation5 + $0x40] sm:$0xf]  ;;  %v890_v28 = vld [vmem:[#allocation5 + $0x40] sm:$0xf0]  ;;  %v901_v34 = vmul.f32 %v2810_v33, %v889_v30 }
 0x155   : > { %752 = vst.msk [vmem:[#allocation5 + $0x18] sm:$0xff] %vm748_vm9, %v712_v50  ;;  %787 = vrot.lane.b32.xlu1 %v784_v54, %s2561_s11  ;;  %v902_v32 = vmul.f32 %v2799_v24, %v890_v28 }
 0x156   : > { %765 = vst.msk [vmem:[#allocation5 + $0x70] sm:$0xf] %vm764_vm11, %v726_v53  ;;  %v907_v37 = vrot.slane %v901_v34, 4 }
 0x157   : > { %v908_v36 = vrot.slane %v902_v32, 4  ;;  %v2321_v32 = vld [vmem:[%s2651_s16 + $0x90] sm:$0xff] }
 0x15a   : > { %v714_v55 = vpop.permute.xlu1 %713  ;;  %v780_v56 = vld [vmem:[#allocation5 + $0x10] sm:$0xf0] }
 0x15b   : > { %v729_v57 = vsel %vm727_vm10, %v712_v50, %v714_v55  ;;  %754 = vst.msk [vmem:[#allocation5 + $0x28] sm:$0xff] %vm727_vm10, %v714_v55  ;;  %v786_v58 = vrot.slane %v780_v56, 4  ;;  %v779_v59 = vld [vmem:[#allocation5 + $0x8] sm:$0xf0]  ;;  %v2826_v50 = vsel %vm929_vm0, %v2821_v44, %v2818_v39  ;;  %v768_v34 = vld [vmem:[#allocation5 + $0x8] sm:$0xf] }
 0x15c   : > { %753 = vst [vmem:[#allocation5 + $0x20] sm:$0xff] %v729_v57  ;;  %v785_v60 = vrot.slane %v779_v59, 4  ;;  %v800_v63 = vld [vmem:[#allocation5 + $0x18] sm:$0xf]  ;;  %v833_v13 = vld [vmem:[#allocation5 + $0x18] sm:$0xf0]  ;;  %v2840_v59 = vunpack.i.l.bf16 %v2746_v40 }
 0x15d   : > { %791 = vrot.lane.b32.xlu2 %v786_v58, %s2561_s11  ;;  %v814_v10 = vmul.f32 %v2767_v62, %v800_v63  ;;  %v847_v17 = vmul.f32 %v2771_v3, %v833_v13  ;;  %v2837_v58 = vunpack.i.h.bf16 %v2746_v40  ;;  %v2364_v40 = vld [vmem:[%s2661_s7 + $0x4] sm:$0xf] }
 0x15e   : > { %789 = vrot.lane.b32.xlu1 %v785_v60, %s2561_s11  ;;  %v977_v60 = vld [vmem:[#allocation5 + $0x70] sm:$0xf] }
 0x15f   : > { %v853_v23 = vrot.slane %v847_v17, 4  ;;  %v1037_v17 = vld.sshfl [vmem:[#allocation1 + $0x8] sm:$0xff pattern:$0x75316420] }
 0x160   : > { %2334 = vmatpush.msk.msra.mxu3 %vm444_vm3, %v1037_v17 }
 0x162   : > { %v720_v0 = vpop.permute.xlu0 %719  ;;  %v802_v1 = vld [vmem:[#allocation5 + $0x28] sm:$0xf]  ;;  %v835_v11 = vld [vmem:[#allocation5 + $0x28] sm:$0xf0] }
 0x163   : > { %v722_v4 = vpop.permute.xlu1 %721  ;;  %758 = vst.msk [vmem:[#allocation5 + $0x48] sm:$0xff] %vm748_vm9, %v720_v0  ;;  %v816_v5 = vmul.f32 %v2765_v61, %v802_v1  ;;  %v801_v6 = vld [vmem:[#allocation5 + $0x20] sm:$0xf]  ;;  %v834_v12 = vld [vmem:[#allocation5 + $0x20] sm:$0xf0]  ;;  %v849_v14 = vmul.f32 %v2769_v2, %v835_v11  ;;  %v989_v1 = vmul.f32 %v2837_v58, %v977_v60 }
 0x164   : > { %760 = vst.msk [vmem:[#allocation5 + $0x58] sm:$0xff] %vm727_vm10, %v722_v4  ;;  %v731_v8 = vsel %vm727_vm10, %v720_v0, %v722_v4  ;;  %v815_v9 = vmul.f32 %v2777_v7, %v801_v6  ;;  %v848_v16 = vmul.f32 %v2789_v15, %v834_v12  ;;  %v2845_v4 = vsel %vm982_vm1, %v2840_v59, %v2837_v58 }
 0x165   : > { %759 = vst [vmem:[#allocation5 + $0x50] sm:$0xff] %v731_v8  ;;  %824 = vrot.lane.b32.xlu0 %v816_v5, %s2562_s13  ;;  %v855_v20 = vrot.slane %v849_v14, 4 }
 0x166   : > { %822 = vrot.lane.b32.xlu2 %v815_v9, %s2562_s13  ;;  %820 = vrot.lane.b32.xlu1 %v814_v10, %s2562_s13  ;;  %v854_v22 = vrot.slane %v848_v16, 4  ;;  %v1036_v16 = vld.sshfl [vmem:[#allocation1] sm:$0xff pattern:$0x75316420] }
 0x167   : > { %2328 = vmatpush.msk.msra.mxu2 %vm444_vm3, %v1036_v16 }
 0x16a   : > { %v922_v48 = vld [vmem:[#allocation5 + $0x48] sm:$0xf]  ;;  %v953_v54 = vld [vmem:[#allocation5 + $0x48] sm:$0xf0] }
 0x16b   : > { %v724_v19 = vpop.permute.xlu1 %723  ;;  %v924_v46 = vld [vmem:[#allocation5 + $0x58] sm:$0xf]  ;;  %v934_v52 = vmul.f32 %v2821_v44, %v922_v48  ;;  %v955_v45 = vld [vmem:[#allocation5 + $0x58] sm:$0xf0]  ;;  %v959_v57 = vrot.slane %v953_v54, 4 }
 0x16c   : > { %v732_v21 = vsel %vm727_vm10, %v724_v19, %v726_v53  ;;  %762 = vst.msk [vmem:[#allocation5 + $0x60] sm:$0xf] %vm761_vm14, %v724_v19  ;;  %v923_v47 = vld [vmem:[#allocation5 + $0x50] sm:$0xf]  ;;  %v936_v49 = vmul.f32 %v2818_v39, %v924_v46  ;;  %v954_v53 = vld [vmem:[#allocation5 + $0x50] sm:$0xf0] }
 0x16d   : > { %763 = vst [vmem:[#allocation5 + $0x68] sm:$0xf] %v732_v21  ;;  %860 = vrot.lane.b32.xlu0 %v855_v20, %s2563_s14  ;;  %v935_v51 = vmul.f32 %v2826_v50, %v923_v47  ;;  %v961_v55 = vrot.slane %v955_v45, 4  ;;  %v960_v56 = vrot.slane %v954_v53, 4  ;;  %v2318_v19 = vld [vmem:[%s2651_s16 + $0x78] sm:$0xff] }
 0x16e   : > { %858 = vrot.lane.b32.xlu2 %v854_v22, %s2563_s14  ;;  %856 = vrot.lane.b32.xlu1 %v853_v23, %s2563_s14  ;;  %v2319_v23 = vld [vmem:[%s2651_s16 + $0x80] sm:$0xff] }
 0x16f   : > { %2329 = vmatmul.msk.f32.vlgmr.msra.gmra.mxu2 %vm428_vm4, %v2318_v19  ;;  %2335 = vmatmul.msk.f32.vlgmr.msra.gmra.mxu3 %vm428_vm4, %v2318_v19 }
 0x173   : > { %v975_v63 = vld [vmem:[#allocation5 + $0x60] sm:$0xf] }
 0x174   : > { %v976_v0 = vld [vmem:[#allocation5 + $0x68] sm:$0xf]  ;;  %v987_v5 = vmul.f32 %v2840_v59, %v975_v63 }
 0x175   : > { %879 = vrot.lane.b32.xlu0 %v871_v26, %s2564_s15  ;;  %v988_v6 = vmul.f32 %v2845_v4, %v976_v0 }
 0x176   : > { %877 = vrot.lane.b32.xlu2 %v870_v29, %s2564_s15  ;;  %875 = vrot.lane.b32.xlu1 %v869_v27, %s2564_s15  ;;  %v2320_v29 = vld [vmem:[%s2651_s16 + $0x88] sm:$0xff] }
 0x177   : > { %2330 = vmatmul.msk.f32.gmra.mxu2 %vm428_vm4, %v2319_v23  ;;  %2336 = vmatmul.msk.f32.gmra.mxu3 %vm428_vm4, %v2319_v23 }
 0x17d   : > { %913 = vrot.lane.b32.xlu0 %v908_v36, %s2565_s17 }
 0x17e   : > { %911 = vrot.lane.b32.xlu2 %v907_v37, %s2565_s17  ;;  %909 = vrot.lane.b32.xlu1 %v906_v38, %s2565_s17  ;;  %v770_v37 = vmul.f32 %v2729_v43, %v768_v34  ;;  %v769_v38 = vmul.f32 %v2727_v42, %v767_v35 }
 0x17f   : > { %2331 = vmatmul.msk.f32.gmra.mxu2 %vm428_vm4, %v2320_v29  ;;  %2337 = vmatmul.msk.f32.gmra.mxu3 %vm428_vm4, %v2320_v29 }
 0x180   : > { %v776_v45 = vadd.f32 %v2748_v41, %v769_v38 }
 0x185   : > { %944 = vrot.lane.b32.xlu0 %v936_v49, %s2566_s19  ;;  %v777_v49 = vadd.f32 %v2748_v41, %v770_v37  ;;  %v407_v37 = vld [vmem:[#allocation2] sm:$0xff] }
 0x186   : > { %942 = vrot.lane.b32.xlu2 %v935_v51, %s2566_s19  ;;  %940 = vrot.lane.b32.xlu1 %v934_v52, %s2566_s19  ;;  %v2322_v52 = vld [vmem:[%s2651_s16 + $0x98] sm:$0xf] }
 0x187   : > { %2332 = vmatmul.msk.f32.gmra.mxu2 %vm428_vm4, %v2321_v32  ;;  %2338 = vmatmul.msk.f32.gmra.mxu3 %vm428_vm4, %v2321_v32 }
 0x18d   : > { %966 = vrot.lane.b32.xlu0 %v961_v55, %s2567_s28 }
 0x18e   : > { %964 = vrot.lane.b32.xlu2 %v960_v56, %s2567_s28  ;;  %962 = vrot.lane.b32.xlu1 %v959_v57, %s2567_s28 }
 0x18f   : > { %2333 = vmatmul.msk.f32.gmra.mxu2 %vm428_vm4, %v2322_v52  ;;  %2339 = vmatmul.msk.f32.gmra.mxu3 %vm428_vm4, %v2322_v52  ;;  %v2323_v52 = vld [vmem:[%s2656_s29 + $0x28] sm:$0xff] }
 0x195   : > { %997 = vrot.lane.b32.xlu0 %v989_v1, %s2568_s27 }
 0x196   : > { %993 = vrot.lane.b32.xlu1 %v987_v5, %s2568_s27  ;;  %995 = vrot.lane.b32.xlu2 %v988_v6, %s2568_s27 }
 0x19d   : > { %1377 = vperm.xlu0 %2510, %v2364_v40  }
 0x1b7   : > { %v792_v8 = vpop.permute.xlu2 %791 }
 0x1c0   : > { %v823_v10 = vpop.permute.xlu2 %822 }
 0x1c7   : > { %v788_v9 = vpop.permute.xlu1 %787 }
 0x1c8   : > { %v859_v12 = vpop.permute.xlu2 %858 }
 0x1d0   : > { %v790_v11 = vpop.permute.xlu1 %789  ;;  %v878_v20 = vpop.permute.xlu2 %877 }
 0x1d1   : > { %v795_v47 = vsel %vm793_vm2, %v790_v11, %v792_v8  ;;  %v794_v51 = vsel %vm793_vm2, %v788_v9, %v790_v11 }
 0x1d2   : > { %v799_v54 = vadd.f32 %v795_v47, %v777_v49  ;;  %v798_v56 = vadd.f32 %v794_v51, %v776_v45  ;;  %v2313_v47 = vld [vmem:[%s2651_s16 + $0x50] sm:$0xff]  ;;  %v2314_v51 = vld [vmem:[%s2651_s16 + $0x58] sm:$0xff] }
 0x1d7   : > { %v825_v13 = vpop.permute.xlu0 %824 }
 0x1d8   : > { %v821_v14 = vpop.permute.xlu1 %820  ;;  %v912_v28 = vpop.permute.xlu2 %911  ;;  %v828_v53 = vsel %vm826_vm5, %v823_v10, %v825_v13 }
 0x1d9   : > { %v827_v55 = vsel %vm826_vm5, %v821_v14, %v823_v10  ;;  %v832_v60 = vadd.f32 %v828_v53, %v799_v54  ;;  %v2315_v54 = vld [vmem:[%s2651_s16 + $0x60] sm:$0xff] }
 0x1da   : > { %v831_v1 = vadd.f32 %v827_v55, %v798_v56  ;;  %v2324_v55 = vld [vmem:[%s2656_s29 + $0x30] sm:$0xff]  ;;  %v2316_v56 = vld [vmem:[%s2651_s16 + $0x68] sm:$0xff] }
 0x1df   : > { %v861_v21 = vpop.permute.xlu0 %860 }
 0x1e0   : > { %v857_v22 = vpop.permute.xlu1 %856  ;;  %v943_v36 = vpop.permute.xlu2 %942  ;;  %v864_v57 = vsel %vm862_vm6, %v859_v12, %v861_v21 }
 0x1e1   : > { %v863_v63 = vsel %vm862_vm6, %v857_v22, %v859_v12  ;;  %v868_v5 = vadd.f32 %v864_v57, %v832_v60  ;;  %v2325_v57 = vld [vmem:[%s2656_s29 + $0x38] sm:$0xff]  ;;  %v2317_v60 = vld [vmem:[%s2651_s16 + $0x70] sm:$0xf] }
 0x1e2   : > { %v867_v8 = vadd.f32 %v863_v63, %v831_v1  ;;  %v2326_v63 = vld [vmem:[%s2656_s29 + $0x40] sm:$0xff] }
 0x1e7   : > { %v880_v26 = vpop.permute.xlu0 %879 }
 0x1e8   : > { %v876_v27 = vpop.permute.xlu1 %875  ;;  %v965_v0 = vpop.permute.xlu2 %964  ;;  %v883_v41 = vsel %vm881_vm7, %v878_v20, %v880_v26 }
 0x1e9   : > { %v882_v6 = vsel %vm881_vm7, %v876_v27, %v878_v20  ;;  %v887_v11 = vadd.f32 %v883_v41, %v868_v5 }
 0x1ea   : > { %v886_v12 = vadd.f32 %v882_v6, %v867_v8 }
 0x1ef   : > { %v914_v30 = vpop.permute.xlu0 %913 }
 0x1f0   : > { %v910_v31 = vpop.permute.xlu1 %909  ;;  %v917_v9 = vsel %vm915_vm8, %v912_v28, %v914_v30  ;;  %v996_v26 = vpop.permute.xlu2 %995 }
 0x1f1   : > { %v916_v13 = vsel %vm915_vm8, %v910_v31, %v912_v28  ;;  %v921_v16 = vadd.f32 %v917_v9, %v887_v11 }
 0x1f2   : > { %v920_v19 = vadd.f32 %v916_v13, %v886_v12  ;;  %v1074_v1 = vpop.f32.mrf.mxu2  ;;  %v1106_v41 = vpop.f32.mrf.mxu3 }
 0x1f7   : > { %v945_v46 = vpop.permute.xlu0 %944 }
 0x1f8   : > { %v941_v48 = vpop.permute.xlu1 %940  ;;  %v948_v14 = vsel %vm946_vm12, %v943_v36, %v945_v46 }
 0x1f9   : > { %v947_v17 = vsel %vm946_vm12, %v941_v48, %v943_v36  ;;  %v952_v20 = vadd.f32 %v948_v14, %v921_v16 }
 0x1fa   : > { %v951_v23 = vadd.f32 %v947_v17, %v920_v19  ;;  %v1077_v5 = vpop.f32.mrf.mxu2  ;;  %v1109_v6 = vpop.f32.mrf.mxu3 }
 0x1ff   : > { %v967_v40 = vpop.permute.xlu0 %966 }
 0x200   : > { %v963_v10 = vpop.permute.xlu1 %962  ;;  %v970_v21 = vsel %vm968_vm13, %v965_v0, %v967_v40 }
 0x201   : > { %v969_v22 = vsel %vm968_vm13, %v963_v10, %v965_v0  ;;  %v974_v27 = vadd.f32 %v970_v21, %v952_v20  ;;  %v2327_v0 = vld [vmem:[%s2656_s29 + $0x48] sm:$0xf] }
 0x202   : > { %v973_v28 = vadd.f32 %v969_v22, %v951_v23  ;;  %v1080_v40 = vpop.f32.mrf.mxu2  ;;  %v1112_v8 = vpop.f32.mrf.mxu3 }
 0x207   : > { %v998_v29 = vpop.permute.xlu0 %997 }
 0x208   : > { %v1001_v30 = vsel %vm999_vm15, %v996_v26, %v998_v29  ;;  %v994_v31 = vpop.permute.xlu1 %993 }
 0x209   : > { %v1005_v32 = vadd.f32 %v1001_v30, %v974_v27  ;;  %v1000_v34 = vsel %vm999_vm15, %v994_v31, %v996_v26 }
 0x20a   : > { %v1004_v35 = vadd.f32 %v1000_v34, %v973_v28  ;;  %v1083_v9 = vpop.f32.mrf.mxu2  ;;  %v1115_v10 = vpop.f32.mrf.mxu3 }
 0x20b   : > { %v1008_v36 = vrot.slane %v1005_v32, 4 }
 0x20d   : > { %v1009_v38 = vsel %vm444_vm3, %v1004_v35, %v1008_v36 }
 0x20e   : > { %v2891_v46 = vadd.f32 %v1009_v38, %v407_v37 }
 0x210   : > { %1012 = vst [vmem:[#allocation2] sm:$0xff] %v2891_v46 }
 0x211   : > { %1122 = vst [vmem:[#allocation1] ss:$2 sm:$0xff] %v2891_v46 }
 0x212   : > { %v1086_v12 = vpop.f32.mrf.mxu2  ;;  %v1118_v14 = vpop.f32.mrf.mxu3 }
 0x218   : > { %v1123_v48 = vld.sshfl [vmem:[#allocation1] sm:$0xff pattern:$0x75316420]  ;;  %v1124_v49 = vld.sshfl [vmem:[#allocation1 + $0x8] sm:$0xff pattern:$0x75316420] }
 0x219   : > { %2340 = vmatpush.msk.msra.mxu0 %vm444_vm3, %v1123_v48  ;;  %2346 = vmatpush.msk.msra.mxu1 %vm444_vm3, %v1124_v49  ;;  %1208 = vst [vmem:[#allocation1] ss:$2 sm:$0xff] %v2681_v18 }
 0x21a   : > { %2341 = vmatmul.msk.f32.vlgmr.msra.gmra.mxu0 %vm428_vm4, %v2313_v47  ;;  %2347 = vmatmul.msk.f32.vlgmr.msra.gmra.mxu1 %vm428_vm4, %v2313_v47 }
 0x220   : > { %v1209_v45 = vld.sshfl [vmem:[#allocation1] sm:$0xff pattern:$0x75316420]  ;;  %v1210_v53 = vld.sshfl [vmem:[#allocation1 + $0x8] sm:$0xff pattern:$0x75316420] }
 0x221   : > { %2352 = vmatpush.msk.msrb.mxu2 %vm444_vm3, %v1209_v45  ;;  %2358 = vmatpush.msk.msrb.mxu3 %vm444_vm3, %v1210_v53 }
 0x222   : > { %2342 = vmatmul.msk.f32.gmra.mxu0 %vm428_vm4, %v2314_v51  ;;  %2348 = vmatmul.msk.f32.gmra.mxu1 %vm428_vm4, %v2314_v51 }
 0x223   : > { %2353 = vmatmul.msk.f32.vlgmr.msrb.gmra.mxu2 %vm428_vm4, %v2323_v52  ;;  %2359 = vmatmul.msk.f32.vlgmr.msrb.gmra.mxu3 %vm428_vm4, %v2323_v52 }
 0x22a   : > { %2343 = vmatmul.msk.f32.gmra.mxu0 %vm428_vm4, %v2315_v54  ;;  %2349 = vmatmul.msk.f32.gmra.mxu1 %vm428_vm4, %v2315_v54 }
 0x22b   : > { %2354 = vmatmul.msk.f32.gmra.mxu2 %vm428_vm4, %v2324_v55  ;;  %2360 = vmatmul.msk.f32.gmra.mxu3 %vm428_vm4, %v2324_v55 }
 0x232   : > { %2344 = vmatmul.msk.f32.gmra.mxu0 %vm428_vm4, %v2316_v56  ;;  %2350 = vmatmul.msk.f32.gmra.mxu1 %vm428_vm4, %v2316_v56 }
 0x233   : > { %2355 = vmatmul.msk.f32.gmra.mxu2 %vm428_vm4, %v2325_v57  ;;  %2361 = vmatmul.msk.f32.gmra.mxu3 %vm428_vm4, %v2325_v57 }
 0x23a   : > { %2345 = vmatmul.msk.f32.gmra.mxu0 %vm428_vm4, %v2317_v60  ;;  %2351 = vmatmul.msk.f32.gmra.mxu1 %vm428_vm4, %v2317_v60 }
 0x23b   : > { %2356 = vmatmul.msk.f32.gmra.mxu2 %vm428_vm4, %v2326_v63  ;;  %2362 = vmatmul.msk.f32.gmra.mxu3 %vm428_vm4, %v2326_v63 }
 0x243   : > { %2357 = vmatmul.msk.f32.gmra.mxu2 %vm428_vm4, %v2327_v0  ;;  %2363 = vmatmul.msk.f32.gmra.mxu3 %vm428_vm4, %v2327_v0 }
 0x297   : > { %v1161_v11 = vpop.f32.mrf.mxu0  ;;  %v1193_v13 = vpop.f32.mrf.mxu1 }
 0x298   : > { %v1162_v19 = vadd.f32 %v1161_v11, %v1074_v1  ;;  %v1194_v21 = vadd.f32 %v1193_v13, %v1106_v41  ;;  %v2943_v13 = vpop.permute.xlu0 %1377 }
 0x29f   : > { %v1164_v16 = vpop.f32.mrf.mxu0  ;;  %v1196_v17 = vpop.f32.mrf.mxu1 }
 0x2a0   : > { %v1165_v27 = vadd.f32 %v1164_v16, %v1077_v5  ;;  %v1197_v29 = vadd.f32 %v1196_v17, %v1109_v6 }
 0x2a6   : > { %v1247_v20 = vpop.f32.mrf.mxu2  ;;  %v1279_v22 = vpop.f32.mrf.mxu3 }
 0x2a7   : > { %v1294_v23 = vadd.f32 %v1247_v20, %v1162_v19  ;;  %v1295_v26 = vadd.f32 %v1279_v22, %v1194_v21  ;;  %v1167_v28 = vpop.f32.mrf.mxu0  ;;  %v1199_v30 = vpop.f32.mrf.mxu1 }
 0x2a8   : > { %v1168_v36 = vadd.f32 %v1167_v28, %v1080_v40  ;;  %v1200_v37 = vadd.f32 %v1199_v30, %v1112_v8 }
 0x2a9   : > { %1316 = vrot.lane.b32.xlu0 %v1295_v26, %s2560_s10  ;;  %1314 = vrot.lane.b32.xlu2 %v1294_v23, %s2560_s10 }
 0x2ae   : > { %v1250_v31 = vpop.f32.mrf.mxu2  ;;  %v1282_v32 = vpop.f32.mrf.mxu3 }
 0x2af   : > { %v1296_v34 = vadd.f32 %v1250_v31, %v1165_v27  ;;  %v1297_v35 = vadd.f32 %v1282_v32, %v1197_v29  ;;  %v1170_v51 = vpop.f32.mrf.mxu0  ;;  %v1202_v52 = vpop.f32.mrf.mxu1 }
 0x2b0   : > { %v1171_v45 = vadd.f32 %v1170_v51, %v1083_v9  ;;  %v1203_v53 = vadd.f32 %v1202_v52, %v1115_v10 }
 0x2b1   : > { %1318 = vrot.lane.b32.xlu1 %v1296_v34, %s2560_s10  ;;  %1320 = vrot.lane.b32.xlu2 %v1297_v35, %s2560_s10 }
 0x2b6   : > { %v1253_v38 = vpop.f32.mrf.mxu2  ;;  %v1285_v47 = vpop.f32.mrf.mxu3 }
 0x2b7   : > { %v1298_v48 = vadd.f32 %v1253_v38, %v1168_v36  ;;  %v1299_v49 = vadd.f32 %v1285_v47, %v1200_v37  ;;  %v1173_v60 = vpop.f32.mrf.mxu0  ;;  %v1205_v63 = vpop.f32.mrf.mxu1 }
 0x2b8   : > { %v1174_v0 = vadd.f32 %v1173_v60, %v1086_v12  ;;  %v1206_v1 = vadd.f32 %v1205_v63, %v1118_v14 }
 0x2b9   : > { %1322 = vrot.lane.b32.xlu0 %v1298_v48, %s2560_s10  ;;  %1324 = vrot.lane.b32.xlu1 %v1299_v49, %s2560_s10 }
 0x2be   : > { %v1256_v54 = vpop.f32.mrf.mxu2  ;;  %v1288_v55 = vpop.f32.mrf.mxu3 }
 0x2bf   : > { %v1300_v56 = vadd.f32 %v1256_v54, %v1171_v45  ;;  %v1301_v57 = vadd.f32 %v1288_v55, %v1203_v53 }
 0x2c1   : > { %1328 = vrot.lane.b32.xlu0 %v1301_v57, %s2560_s10  ;;  %1326 = vrot.lane.b32.xlu2 %v1300_v56, %s2560_s10 }
 0x2c6   : > { %v1259_v41 = vpop.f32.mrf.mxu2  ;;  %v1291_v5 = vpop.f32.mrf.mxu3 }
 0x2c7   : > { %v1302_v6 = vadd.f32 %v1259_v41, %v1174_v0  ;;  %v1303_v40 = vadd.f32 %v1291_v5, %v1206_v1 }
 0x2c9   : > { %1330 = vrot.lane.b32.xlu1 %v1302_v6, %s2560_s10  ;;  %1332 = vrot.lane.b32.xlu2 %v1303_v40, %s2560_s10 }
 0x303   : > { %v1315_v8 = vpop.permute.xlu2 %1314 }
 0x304   : > { %1354 = vst.msk [vmem:[#allocation5] sm:$0xff] %vm748_vm9, %v1315_v8 }
 0x30b   : > { %v1321_v9 = vpop.permute.xlu2 %1320  ;;  %v1382_v10 = vld [vmem:[#allocation5] sm:$0xf0] }
 0x30c   : > { %1359 = vst.msk [vmem:[#allocation5 + $0x28] sm:$0xff] %vm727_vm10, %v1321_v9  ;;  %v1388_v11 = vrot.slane %v1382_v10, 4 }
 0x30e   : > { %1391 = vrot.lane.b32.xlu0 %v1388_v11, %s2561_s11 }
 0x313   : > { %v1405_v27 = vld [vmem:[#allocation5 + $0x28] sm:$0xf]  ;;  %v1426_v38 = vld [vmem:[#allocation5 + $0x28] sm:$0xf0] }
 0x314   : > { %v1408_v34 = vmul.f32 %v2765_v61, %v1405_v27  ;;  %v1429_v49 = vmul.f32 %v2769_v2, %v1426_v38 }
 0x316   : > { %v1435_v54 = vrot.slane %v1429_v49, 4 }
 0x31b   : > { %v1317_v12 = vpop.permute.xlu0 %1316  ;;  %v1327_v14 = vpop.permute.xlu2 %1326 }
 0x31c   : > { %v1334_v16 = vsel %vm727_vm10, %v1315_v8, %v1317_v12  ;;  %1356 = vst.msk [vmem:[#allocation5 + $0x10] sm:$0xff] %vm727_vm10, %v1317_v12 }
 0x31d   : > { %1355 = vst [vmem:[#allocation5 + $0x8] sm:$0xff] %v1334_v16 }
 0x31e   : > { %1363 = vst.msk [vmem:[#allocation5 + $0x48] sm:$0xff] %vm748_vm9, %v1327_v14 }
 0x323   : > { %v1319_v17 = vpop.permute.xlu1 %1318  ;;  %v1333_v19 = vpop.permute.xlu2 %1332  ;;  %v1384_v21 = vld [vmem:[#allocation5 + $0x10] sm:$0xf0] }
 0x324   : > { %v1335_v20 = vsel %vm727_vm10, %v1319_v17, %v1321_v9  ;;  %1357 = vst.msk [vmem:[#allocation5 + $0x18] sm:$0xff] %vm748_vm9, %v1319_v17  ;;  %v1390_v22 = vrot.slane %v1384_v21, 4  ;;  %v1383_v23 = vld [vmem:[#allocation5 + $0x8] sm:$0xf0] }
 0x325   : > { %1358 = vst [vmem:[#allocation5 + $0x20] sm:$0xff] %v1335_v20  ;;  %v1389_v26 = vrot.slane %v1383_v23, 4 }
 0x326   : > { %1368 = vst.msk [vmem:[#allocation5 + $0x70] sm:$0xf] %vm764_vm11, %v1333_v19  ;;  %1395 = vrot.lane.b32.xlu2 %v1390_v22, %s2561_s11  ;;  %v1511_v22 = vld [vmem:[#allocation5 + $0x48] sm:$0xf0] }
 0x327   : > { %1393 = vrot.lane.b32.xlu1 %v1389_v26, %s2561_s11  ;;  %v1517_v27 = vrot.slane %v1511_v22, 4 }
 0x32b   : > { %v1323_v29 = vpop.permute.xlu0 %1322  ;;  %v1325_v28 = vpop.permute.xlu1 %1324  ;;  %v1403_v30 = vld [vmem:[#allocation5 + $0x18] sm:$0xf]  ;;  %v1424_v37 = vld [vmem:[#allocation5 + $0x18] sm:$0xf0] }
 0x32c   : > { %1360 = vst.msk [vmem:[#allocation5 + $0x30] sm:$0xff] %vm748_vm9, %v1323_v29  ;;  %v1336_v31 = vsel %vm727_vm10, %v1323_v29, %v1325_v28  ;;  %v1406_v32 = vmul.f32 %v2767_v62, %v1403_v30  ;;  %v1404_v35 = vld [vmem:[#allocation5 + $0x20] sm:$0xf]  ;;  %v1425_v47 = vld [vmem:[#allocation5 + $0x20] sm:$0xf0]  ;;  %v1427_v48 = vmul.f32 %v2771_v3, %v1424_v37 }
 0x32d   : > { %1361 = vst [vmem:[#allocation5 + $0x38] sm:$0xff] %v1336_v31  ;;  %v1407_v36 = vmul.f32 %v1404_v35, %v2777_v7  ;;  %v1428_v51 = vmul.f32 %v1425_v47, %v2789_v15  ;;  %v1534_v30 = vld [vmem:[#allocation5 + $0x70] sm:$0xf] }
 0x32e   : > { %1362 = vst.msk [vmem:[#allocation5 + $0x40] sm:$0xff] %vm727_vm10, %v1325_v28  ;;  %1412 = vrot.lane.b32.xlu0 %v1406_v32, %s2562_s13  ;;  %1416 = vrot.lane.b32.xlu2 %v1408_v34, %s2562_s13  ;;  %v1433_v53 = vrot.slane %v1427_v48, 4  ;;  %v1537_v34 = vmul.f32 %v2837_v58, %v1534_v30 }
 0x32f   : > { %1414 = vrot.lane.b32.xlu1 %v1407_v36, %s2562_s13  ;;  %v1434_v55 = vrot.slane %v1428_v51, 4 }
 0x333   : > { %v1329_v52 = vpop.permute.xlu0 %1328  ;;  %v1448_v60 = vld [vmem:[#allocation5 + $0x30] sm:$0xf]  ;;  %v1466_v63 = vld [vmem:[#allocation5 + $0x30] sm:$0xf0] }
 0x334   : > { %v1337_v45 = vsel %vm727_vm10, %v1327_v14, %v1329_v52  ;;  %1365 = vst.msk [vmem:[#allocation5 + $0x58] sm:$0xff] %vm727_vm10, %v1329_v52  ;;  %v1449_v41 = vld [vmem:[#allocation5 + $0x38] sm:$0xf]  ;;  %v1467_v5 = vld [vmem:[#allocation5 + $0x38] sm:$0xf0]  ;;  %v1469_v6 = vmul.f32 %v2802_v25, %v1466_v63 }
 0x335   : > { %1364 = vst [vmem:[#allocation5 + $0x50] sm:$0xff] %v1337_v45  ;;  %v1450_v0 = vld [vmem:[#allocation5 + $0x40] sm:$0xf]  ;;  %v1468_v1 = vld [vmem:[#allocation5 + $0x40] sm:$0xf0]  ;;  %v1470_v8 = vmul.f32 %v1467_v5, %v2810_v33 }
 0x336   : > { %1436 = vrot.lane.b32.xlu0 %v1433_v53, %s2563_s14  ;;  %1440 = vrot.lane.b32.xlu2 %v1435_v54, %s2563_s14  ;;  %v1471_v40 = vmul.f32 %v2799_v24, %v1468_v1  ;;  %v1475_v9 = vrot.slane %v1469_v6, 4  ;;  %v1490_v14 = vld [vmem:[#allocation5 + $0x48] sm:$0xf]  ;;  %v1371_v1 = vld [vmem:[#allocation5] sm:$0xf] }
 0x337   : > { %1438 = vrot.lane.b32.xlu1 %v1434_v55, %s2563_s14  ;;  %v1476_v11 = vrot.slane %v1470_v8, 4  ;;  %v1372_v63 = vld [vmem:[#allocation5 + $0x8] sm:$0xf]  ;;  %v1373_v6 = vmul.f32 %v2727_v42, %v1371_v1 }
 0x338   : > { %v1477_v10 = vrot.slane %v1471_v40, 4 }
 0x33b   : > { %v1331_v56 = vpop.permute.xlu1 %1330  ;;  %v1492_v12 = vld [vmem:[#allocation5 + $0x58] sm:$0xf]  ;;  %v1513_v20 = vld [vmem:[#allocation5 + $0x58] sm:$0xf0] }
 0x33c   : > { %v1338_v57 = vsel %vm727_vm10, %v1331_v56, %v1333_v19  ;;  %1366 = vst.msk [vmem:[#allocation5 + $0x60] sm:$0xf] %vm761_vm14, %v1331_v56  ;;  %v1491_v16 = vld [vmem:[#allocation5 + $0x50] sm:$0xf]  ;;  %v1495_v17 = vmul.f32 %v2818_v39, %v1492_v12  ;;  %v1493_v19 = vmul.f32 %v2821_v44, %v1490_v14  ;;  %v1512_v23 = vld [vmem:[#allocation5 + $0x50] sm:$0xf0]  ;;  %v1380_v12 = vadd.f32 %v2943_v13, %v1373_v6 }
 0x33d   : > { %1367 = vst [vmem:[#allocation5 + $0x68] sm:$0xf] %v1338_v57  ;;  %v1494_v21 = vmul.f32 %v1491_v16, %v2826_v50  ;;  %v1519_v26 = vrot.slane %v1513_v20, 4  ;;  %v1518_v29 = vrot.slane %v1512_v23, 4 }
 0x33e   : > { %1454 = vrot.lane.b32.xlu0 %v1448_v60, %s2564_s15  ;;  %1458 = vrot.lane.b32.xlu2 %v1450_v0, %s2564_s15 }
 0x33f   : > { %1456 = vrot.lane.b32.xlu1 %v1449_v41, %s2564_s15  ;;  %v1374_v41 = vmul.f32 %v2729_v43, %v1372_v63 }
 0x343   : > { %v1532_v28 = vld [vmem:[#allocation5 + $0x60] sm:$0xf] }
 0x344   : > { %v1533_v31 = vld [vmem:[#allocation5 + $0x68] sm:$0xf]  ;;  %v1535_v32 = vmul.f32 %v2840_v59, %v1532_v28 }
 0x345   : > { %v1536_v35 = vmul.f32 %v1533_v31, %v2845_v4 }
 0x346   : > { %1478 = vrot.lane.b32.xlu0 %v1475_v9, %s2565_s17  ;;  %1482 = vrot.lane.b32.xlu2 %v1477_v10, %s2565_s17  ;;  %v1381_v9 = vadd.f32 %v2943_v13, %v1374_v41 }
 0x347   : > { %1480 = vrot.lane.b32.xlu1 %v1476_v11, %s2565_s17 }
 0x34e   : > { %1503 = vrot.lane.b32.xlu2 %v1495_v17, %s2566_s19  ;;  %1499 = vrot.lane.b32.xlu0 %v1493_v19, %s2566_s19 }
 0x34f   : > { %1501 = vrot.lane.b32.xlu1 %v1494_v21, %s2566_s19 }
 0x356   : > { %1524 = vrot.lane.b32.xlu2 %v1519_v26, %s2567_s28  ;;  %1520 = vrot.lane.b32.xlu0 %v1517_v27, %s2567_s28 }
 0x357   : > { %1522 = vrot.lane.b32.xlu1 %v1518_v29, %s2567_s28 }
 0x35e   : > { %1541 = vrot.lane.b32.xlu0 %v1535_v32, %s2568_s27  ;;  %1545 = vrot.lane.b32.xlu2 %v1537_v34, %s2568_s27 }
 0x35f   : > { %1543 = vrot.lane.b32.xlu1 %v1536_v35, %s2568_s27 }
 0x380   : > { %v1396_v36 = vpop.permute.xlu2 %1395  ;;  %v1392_v38 = vpop.permute.xlu0 %1391 }
 0x388   : > { %v1417_v37 = vpop.permute.xlu2 %1416 }
 0x390   : > { %v1441_v48 = vpop.permute.xlu2 %1440 }
 0x398   : > { %v1459_v45 = vpop.permute.xlu2 %1458 }
 0x399   : > { %v1394_v47 = vpop.permute.xlu1 %1393 }
 0x39a   : > { %v1398_v8 = vsel %vm793_vm2, %v1394_v47, %v1396_v36  ;;  %v1397_v10 = vsel %vm793_vm2, %v1392_v38, %v1394_v47 }
 0x39b   : > { %v1402_v14 = vadd.f32 %v1398_v8, %v1381_v9  ;;  %v1401_v19 = vadd.f32 %v1397_v10, %v1380_v12  ;;  %v2371_v10 = vld [vmem:[%s2651_s16 + $0xd0] sm:$0xff] }
 0x3a0   : > { %v1413_v49 = vpop.permute.xlu0 %1412  ;;  %v1483_v56 = vpop.permute.xlu2 %1482 }
 0x3a1   : > { %v1415_v51 = vpop.permute.xlu1 %1414 }
 0x3a2   : > { %v1419_v11 = vsel %vm826_vm5, %v1415_v51, %v1417_v37  ;;  %v1418_v16 = vsel %vm826_vm5, %v1413_v49, %v1415_v51 }
 0x3a3   : > { %v1423_v21 = vadd.f32 %v1419_v11, %v1402_v14  ;;  %v1422_v27 = vadd.f32 %v1418_v16, %v1401_v19  ;;  %v2365_v11 = vld [vmem:[%s2651_s16 + $0xa0] sm:$0xff]  ;;  %v2366_v16 = vld [vmem:[%s2651_s16 + $0xa8] sm:$0xff] }
 0x3a8   : > { %v1437_v52 = vpop.permute.xlu0 %1436  ;;  %v1504_v0 = vpop.permute.xlu2 %1503 }
 0x3a9   : > { %v1439_v53 = vpop.permute.xlu1 %1438 }
 0x3aa   : > { %v1443_v17 = vsel %vm862_vm6, %v1439_v53, %v1441_v48  ;;  %v1442_v22 = vsel %vm862_vm6, %v1437_v52, %v1439_v53 }
 0x3ab   : > { %v1447_v29 = vadd.f32 %v1443_v17, %v1423_v21  ;;  %v1446_v31 = vadd.f32 %v1442_v22, %v1422_v27  ;;  %v2367_v21 = vld [vmem:[%s2651_s16 + $0xb0] sm:$0xff]  ;;  %v2368_v22 = vld [vmem:[%s2651_s16 + $0xb8] sm:$0xff] }
 0x3ac   : > { %v2376_v27 = vld [vmem:[%s2656_s29 + $0x58] sm:$0xff] }
 0x3b0   : > { %v1455_v54 = vpop.permute.xlu0 %1454  ;;  %v1525_v20 = vpop.permute.xlu2 %1524 }
 0x3b1   : > { %v1457_v55 = vpop.permute.xlu1 %1456 }
 0x3b2   : > { %v1461_v23 = vsel %vm881_vm7, %v1457_v55, %v1459_v45  ;;  %v1460_v30 = vsel %vm881_vm7, %v1455_v54, %v1457_v55 }
 0x3b3   : > { %v1465_v32 = vadd.f32 %v1461_v23, %v1447_v29  ;;  %v1464_v36 = vadd.f32 %v1460_v30, %v1446_v31  ;;  %v2375_v23 = vld [vmem:[%s2656_s29 + $0x50] sm:$0xff]  ;;  %v2377_v29 = vld [vmem:[%s2656_s29 + $0x60] sm:$0xff] }
 0x3b4   : > { %v2379_v30 = vld [vmem:[%s2656_s29 + $0x70] sm:$0xf] }
 0x3b8   : > { %v1479_v57 = vpop.permute.xlu0 %1478  ;;  %v1546_v45 = vpop.permute.xlu2 %1545 }
 0x3b9   : > { %v1481_v60 = vpop.permute.xlu1 %1480 }
 0x3ba   : > { %v1485_v13 = vsel %vm915_vm8, %v1481_v60, %v1483_v56  ;;  %v1484_v34 = vsel %vm915_vm8, %v1479_v57, %v1481_v60 }
 0x3bb   : > { %v1489_v37 = vadd.f32 %v1485_v13, %v1465_v32  ;;  %v1488_v48 = vadd.f32 %v1484_v34, %v1464_v36  ;;  %v2416_v32 = vld [vmem:[%s2661_s7 + $0x8] sm:$0xf] }
 0x3bc   : > { %1924 = vperm.xlu2 %2511, %v2416_v32  }
 0x3c0   : > { %v1500_v5 = vpop.permute.xlu0 %1499 }
 0x3c1   : > { %v1502_v40 = vpop.permute.xlu1 %1501 }
 0x3c2   : > { %v1506_v35 = vsel %vm946_vm12, %v1502_v40, %v1504_v0  ;;  %v1505_v38 = vsel %vm946_vm12, %v1500_v5, %v1502_v40  ;;  %v1015_v0 = vld [vmem:[#allocation3] sm:$0xff]  ;;  %v2370_v40 = vld [vmem:[%s2651_s16 + $0xc8] sm:$0xff] }
 0x3c3   : > { %v1510_v49 = vadd.f32 %v1506_v35, %v1489_v37  ;;  %v1509_v53 = vadd.f32 %v1505_v38, %v1488_v48 }
 0x3c8   : > { %v1521_v26 = vpop.permute.xlu0 %1520 }
 0x3c9   : > { %v1523_v28 = vpop.permute.xlu1 %1522 }
 0x3ca   : > { %v1527_v47 = vsel %vm968_vm13, %v1523_v28, %v1525_v20  ;;  %v1526_v51 = vsel %vm968_vm13, %v1521_v26, %v1523_v28  ;;  %v2374_v20 = vld [vmem:[%s2651_s16 + $0xe8] sm:$0xf]  ;;  %v2369_v26 = vld [vmem:[%s2651_s16 + $0xc0] sm:$0xf] }
 0x3cb   : > { %v1531_v54 = vadd.f32 %v1527_v47, %v1510_v49  ;;  %v1530_v60 = vadd.f32 %v1526_v51, %v1509_v53  ;;  %v2378_v28 = vld [vmem:[%s2656_s29 + $0x68] sm:$0xff] }
 0x3d0   : > { %v1542_v52 = vpop.permute.xlu0 %1541 }
 0x3d1   : > { %v1544_v55 = vpop.permute.xlu1 %1543 }
 0x3d2   : > { %v1547_v56 = vsel %vm999_vm15, %v1542_v52, %v1544_v55  ;;  %v1548_v57 = vsel %vm999_vm15, %v1544_v55, %v1546_v45 }
 0x3d3   : > { %v1552_v63 = vadd.f32 %v1548_v57, %v1531_v54  ;;  %v1551_v1 = vadd.f32 %v1547_v56, %v1530_v60 }
 0x3d5   : > { %v1555_v41 = vrot.slane %v1552_v63, 4 }
 0x3d7   : > { %v1556_v5 = vsel %vm444_vm3, %v1551_v1, %v1555_v41 }
 0x3d8   : > { %v1558_v6 = vadd.f32 %v1556_v5, %v1015_v0 }
 0x3da   : > { %1559 = vst [vmem:[#allocation3] sm:$0xff] %v1558_v6 }
 0x3db   : > { %1582 = vst [vmem:[#allocation1] ss:$2 sm:$0xff] %v1558_v6 }
 0x3e2   : > { %v1583_v8 = vld.sshfl [vmem:[#allocation1] sm:$0xff pattern:$0x75316420]  ;;  %v1584_v9 = vld.sshfl [vmem:[#allocation1 + $0x8] sm:$0xff pattern:$0x75316420] }
 0x3e3   : > { %2380 = vmatpush.msk.msrb.mxu0 %vm444_vm3, %v1583_v8  ;;  %2386 = vmatpush.msk.msrb.mxu1 %vm444_vm3, %v1584_v9  ;;  %1669 = vst [vmem:[#allocation1] ss:$2 sm:$0xff] %v2891_v46  ;;  %v2372_v46 = vld [vmem:[%s2651_s16 + $0xd8] sm:$0xff] }
 0x3e4   : > { %2381 = vmatmul.msk.f32.vlgmr.msrb.gmra.mxu0 %vm428_vm4, %v2370_v40  ;;  %2387 = vmatmul.msk.f32.vlgmr.msrb.gmra.mxu1 %vm428_vm4, %v2370_v40 }
 0x3ea   : > { %v1670_v12 = vld.sshfl [vmem:[#allocation1] sm:$0xff pattern:$0x75316420]  ;;  %v1671_v14 = vld.sshfl [vmem:[#allocation1 + $0x8] sm:$0xff pattern:$0x75316420] }
 0x3eb   : > { %2392 = vmatpush.msk.msra.mxu2 %vm444_vm3, %v1670_v12  ;;  %2398 = vmatpush.msk.msra.mxu3 %vm444_vm3, %v1671_v14  ;;  %1755 = vst [vmem:[#allocation1] ss:$2 sm:$0xff] %v2681_v18  ;;  %v2373_v18 = vld [vmem:[%s2651_s16 + $0xe0] sm:$0xff] }
 0x3ec   : > { %2382 = vmatmul.msk.f32.gmra.mxu0 %vm428_vm4, %v2371_v10  ;;  %2388 = vmatmul.msk.f32.gmra.mxu1 %vm428_vm4, %v2371_v10 }
 0x3ed   : > { %2393 = vmatmul.msk.f32.vlgmr.msra.gmra.mxu2 %vm428_vm4, %v2365_v11  ;;  %2399 = vmatmul.msk.f32.vlgmr.msra.gmra.mxu3 %vm428_vm4, %v2365_v11 }
 0x3f2   : > { %v1756_v17 = vld.sshfl [vmem:[#allocation1] sm:$0xff pattern:$0x75316420]  ;;  %v1757_v19 = vld.sshfl [vmem:[#allocation1 + $0x8] sm:$0xff pattern:$0x75316420] }
 0x3f3   : > { %2404 = vmatpush.msk.msra.mxu0 %vm444_vm3, %v1756_v17  ;;  %2410 = vmatpush.msk.msra.mxu1 %vm444_vm3, %v1757_v19 }
 0x3f4   : > { %2383 = vmatmul.msk.f32.gmra.mxu0 %vm428_vm4, %v2372_v46  ;;  %2389 = vmatmul.msk.f32.gmra.mxu1 %vm428_vm4, %v2372_v46 }
 0x3f5   : > { %2394 = vmatmul.msk.f32.gmra.mxu2 %vm428_vm4, %v2366_v16  ;;  %2400 = vmatmul.msk.f32.gmra.mxu3 %vm428_vm4, %v2366_v16 }
 0x3fc   : > { %2384 = vmatmul.msk.f32.gmra.mxu0 %vm428_vm4, %v2373_v18  ;;  %2390 = vmatmul.msk.f32.gmra.mxu1 %vm428_vm4, %v2373_v18 }
 0x3fd   : > { %2395 = vmatmul.msk.f32.gmra.mxu2 %vm428_vm4, %v2367_v21  ;;  %2401 = vmatmul.msk.f32.gmra.mxu3 %vm428_vm4, %v2367_v21 }
 0x404   : > { %2385 = vmatmul.msk.f32.gmra.mxu0 %vm428_vm4, %v2374_v20  ;;  %2391 = vmatmul.msk.f32.gmra.mxu1 %vm428_vm4, %v2374_v20 }
 0x405   : > { %2396 = vmatmul.msk.f32.gmra.mxu2 %vm428_vm4, %v2368_v22  ;;  %2402 = vmatmul.msk.f32.gmra.mxu3 %vm428_vm4, %v2368_v22 }
 0x40c   : > { %2405 = vmatmul.msk.f32.vlgmr.msra.gmra.mxu0 %vm428_vm4, %v2375_v23  ;;  %2411 = vmatmul.msk.f32.vlgmr.msra.gmra.mxu1 %vm428_vm4, %v2375_v23 }
 0x40d   : > { %2397 = vmatmul.msk.f32.gmra.mxu2 %vm428_vm4, %v2369_v26  ;;  %2403 = vmatmul.msk.f32.gmra.mxu3 %vm428_vm4, %v2369_v26 }
 0x414   : > { %2406 = vmatmul.msk.f32.gmra.mxu0 %vm428_vm4, %v2376_v27  ;;  %2412 = vmatmul.msk.f32.gmra.mxu1 %vm428_vm4, %v2376_v27 }
 0x41c   : > { %2407 = vmatmul.msk.f32.gmra.mxu0 %vm428_vm4, %v2377_v29  ;;  %2413 = vmatmul.msk.f32.gmra.mxu1 %vm428_vm4, %v2377_v29 }
 0x424   : > { %2408 = vmatmul.msk.f32.gmra.mxu0 %vm428_vm4, %v2378_v28  ;;  %2414 = vmatmul.msk.f32.gmra.mxu1 %vm428_vm4, %v2378_v28 }
 0x42c   : > { %2409 = vmatmul.msk.f32.gmra.mxu0 %vm428_vm4, %v2379_v30  ;;  %2415 = vmatmul.msk.f32.gmra.mxu1 %vm428_vm4, %v2379_v30 }
 0x461   : > { %v1621_v13 = vpop.f32.mrf.mxu0  ;;  %v1653_v31 = vpop.f32.mrf.mxu1 }
 0x469   : > { %v1624_v34 = vpop.f32.mrf.mxu0  ;;  %v1656_v35 = vpop.f32.mrf.mxu1 }
 0x470   : > { %v1708_v48 = vpop.f32.mrf.mxu2  ;;  %v1740_v49 = vpop.f32.mrf.mxu3 }
 0x471   : > { %v1627_v36 = vpop.f32.mrf.mxu0  ;;  %v1659_v37 = vpop.f32.mrf.mxu1  ;;  %v1709_v54 = vadd.f32 %v1708_v48, %v1621_v13  ;;  %v1741_v55 = vadd.f32 %v1740_v49, %v1653_v31 }
 0x478   : > { %v1711_v45 = vpop.f32.mrf.mxu2  ;;  %v1743_v53 = vpop.f32.mrf.mxu3 }
 0x479   : > { %v1630_v38 = vpop.f32.mrf.mxu0  ;;  %v1662_v47 = vpop.f32.mrf.mxu1  ;;  %v1712_v0 = vadd.f32 %v1711_v45, %v1624_v34  ;;  %v1744_v1 = vadd.f32 %v1743_v53, %v1656_v35 }
 0x47a   : > { %v3081_v35 = vpop.permute.xlu2 %1924 }
 0x480   : > { %v1714_v41 = vpop.f32.mrf.mxu2  ;;  %v1746_v5 = vpop.f32.mrf.mxu3 }
 0x481   : > { %v1633_v51 = vpop.f32.mrf.mxu0  ;;  %v1665_v52 = vpop.f32.mrf.mxu1  ;;  %v1715_v10 = vadd.f32 %v1714_v41, %v1627_v36  ;;  %v1747_v11 = vadd.f32 %v1746_v5, %v1659_v37 }
 0x488   : > { %v1717_v17 = vpop.f32.mrf.mxu2  ;;  %v1749_v19 = vpop.f32.mrf.mxu3 }
 0x489   : > { %v1794_v56 = vpop.f32.mrf.mxu0  ;;  %v1826_v57 = vpop.f32.mrf.mxu1  ;;  %v1718_v18 = vadd.f32 %v1717_v17, %v1630_v38  ;;  %v1750_v21 = vadd.f32 %v1749_v19, %v1662_v47 }
 0x48a   : > { %v1841_v60 = vadd.f32 %v1794_v56, %v1709_v54  ;;  %v1842_v63 = vadd.f32 %v1826_v57, %v1741_v55 }
 0x48c   : > { %1861 = vrot.lane.b32.xlu1 %v1841_v60, %s2560_s10  ;;  %1863 = vrot.lane.b32.xlu2 %v1842_v63, %s2560_s10 }
 0x490   : > { %v1720_v27 = vpop.f32.mrf.mxu2  ;;  %v1752_v29 = vpop.f32.mrf.mxu3 }
 0x491   : > { %v1797_v6 = vpop.f32.mrf.mxu0  ;;  %v1829_v40 = vpop.f32.mrf.mxu1  ;;  %v1721_v28 = vadd.f32 %v1720_v27, %v1633_v51  ;;  %v1753_v30 = vadd.f32 %v1752_v29, %v1665_v52 }
 0x492   : > { %v1843_v8 = vadd.f32 %v1797_v6, %v1712_v0  ;;  %v1844_v9 = vadd.f32 %v1829_v40, %v1744_v1 }
 0x494   : > { %1867 = vrot.lane.b32.xlu1 %v1844_v9, %s2560_s10  ;;  %1865 = vrot.lane.b32.xlu0 %v1843_v8, %s2560_s10 }
 0x499   : > { %v1800_v12 = vpop.f32.mrf.mxu0  ;;  %v1832_v14 = vpop.f32.mrf.mxu1 }
 0x49a   : > { %v1845_v46 = vadd.f32 %v1800_v12, %v1715_v10  ;;  %v1846_v16 = vadd.f32 %v1832_v14, %v1747_v11 }
 0x49c   : > { %1871 = vrot.lane.b32.xlu0 %v1846_v16, %s2560_s10  ;;  %1869 = vrot.lane.b32.xlu2 %v1845_v46, %s2560_s10 }
 0x4a1   : > { %v1803_v20 = vpop.f32.mrf.mxu0  ;;  %v1835_v22 = vpop.f32.mrf.mxu1 }
 0x4a2   : > { %v1847_v23 = vadd.f32 %v1803_v20, %v1718_v18  ;;  %v1848_v26 = vadd.f32 %v1835_v22, %v1750_v21 }
 0x4a4   : > { %1875 = vrot.lane.b32.xlu2 %v1848_v26, %s2560_s10  ;;  %1873 = vrot.lane.b32.xlu1 %v1847_v23, %s2560_s10 }
 0x4a9   : > { %v1806_v13 = vpop.f32.mrf.mxu0  ;;  %v1838_v31 = vpop.f32.mrf.mxu1 }
 0x4aa   : > { %v1849_v32 = vadd.f32 %v1806_v13, %v1721_v28  ;;  %v1850_v34 = vadd.f32 %v1838_v31, %v1753_v30 }
 0x4ac   : > { %1879 = vrot.lane.b32.xlu1 %v1850_v34, %s2560_s10  ;;  %1877 = vrot.lane.b32.xlu0 %v1849_v32, %s2560_s10 }
 0x4e6   : > { %v1864_v36 = vpop.permute.xlu2 %1863 }
 0x4e7   : > { %1903 = vst.msk [vmem:[#allocation5 + $0x10] sm:$0xff] %vm727_vm10, %v1864_v36 }
 0x4ee   : > { %v1931_v37 = vld [vmem:[#allocation5 + $0x10] sm:$0xf0] }
 0x4ef   : > { %v1937_v38 = vrot.slane %v1931_v37, 4 }
 0x4f1   : > { %1942 = vrot.lane.b32.xlu2 %v1937_v38, %s2561_s11 }
 0x4f6   : > { %v1870_v47 = vpop.permute.xlu2 %1869 }
 0x4f7   : > { %1907 = vst.msk [vmem:[#allocation5 + $0x30] sm:$0xff] %vm748_vm9, %v1870_v47 }
 0x4fe   : > { %v1862_v48 = vpop.permute.xlu1 %1861  ;;  %v1876_v49 = vpop.permute.xlu2 %1875  ;;  %v2013_v19 = vld [vmem:[#allocation5 + $0x30] sm:$0xf0] }
 0x4ff   : > { %v1881_v51 = vsel %vm727_vm10, %v1862_v48, %v1864_v36  ;;  %1901 = vst.msk [vmem:[#allocation5] sm:$0xff] %vm748_vm9, %v1862_v48  ;;  %v2016_v23 = vmul.f32 %v2802_v25, %v2013_v19 }
 0x500   : > { %1902 = vst [vmem:[#allocation5 + $0x8] sm:$0xff] %v1881_v51 }
 0x501   : > { %1912 = vst.msk [vmem:[#allocation5 + $0x58] sm:$0xff] %vm727_vm10, %v1876_v49  ;;  %v2022_v29 = vrot.slane %v2016_v23, 4 }
 0x506   : > { %v1868_v52 = vpop.permute.xlu1 %1867  ;;  %v1866_v45 = vpop.permute.xlu0 %1865  ;;  %v1929_v53 = vld [vmem:[#allocation5] sm:$0xf0] }
 0x507   : > { %1906 = vst.msk [vmem:[#allocation5 + $0x28] sm:$0xff] %vm727_vm10, %v1868_v52  ;;  %v1882_v54 = vsel %vm727_vm10, %v1866_v45, %v1868_v52  ;;  %v1935_v55 = vrot.slane %v1929_v53, 4  ;;  %v1930_v56 = vld [vmem:[#allocation5 + $0x8] sm:$0xf0] }
 0x508   : > { %1904 = vst.msk [vmem:[#allocation5 + $0x18] sm:$0xff] %vm748_vm9, %v1866_v45  ;;  %v1936_v57 = vrot.slane %v1930_v56, 4  ;;  %v2039_v32 = vld [vmem:[#allocation5 + $0x58] sm:$0xf]  ;;  %v2060_v37 = vld [vmem:[#allocation5 + $0x58] sm:$0xf0] }
 0x509   : > { %1905 = vst [vmem:[#allocation5 + $0x20] sm:$0xff] %v1882_v54  ;;  %1938 = vrot.lane.b32.xlu0 %v1935_v55, %s2561_s11  ;;  %v2066_v48 = vrot.slane %v2060_v37, 4 }
 0x50a   : > { %1940 = vrot.lane.b32.xlu1 %v1936_v57, %s2561_s11 }
 0x50e   : > { %v1872_v60 = vpop.permute.xlu0 %1871  ;;  %v1952_v63 = vld [vmem:[#allocation5 + $0x28] sm:$0xf]  ;;  %v1973_v10 = vld [vmem:[#allocation5 + $0x28] sm:$0xf0] }
 0x50f   : > { %v1883_v0 = vsel %vm727_vm10, %v1870_v47, %v1872_v60  ;;  %1909 = vst.msk [vmem:[#allocation5 + $0x40] sm:$0xff] %vm727_vm10, %v1872_v60  ;;  %v1950_v1 = vld [vmem:[#allocation5 + $0x18] sm:$0xf]  ;;  %v1955_v41 = vmul.f32 %v2765_v61, %v1952_v63  ;;  %v1971_v40 = vld [vmem:[#allocation5 + $0x18] sm:$0xf0]  ;;  %v1976_v61 = vmul.f32 %v2769_v2, %v1973_v10 }
 0x510   : > { %1908 = vst [vmem:[#allocation5 + $0x38] sm:$0xff] %v1883_v0  ;;  %v1953_v5 = vmul.f32 %v2767_v62, %v1950_v1  ;;  %v1951_v6 = vld [vmem:[#allocation5 + $0x20] sm:$0xf]  ;;  %v1972_v9 = vld [vmem:[#allocation5 + $0x20] sm:$0xf0]  ;;  %v1974_v11 = vmul.f32 %v2771_v3, %v1971_v40 }
 0x511   : > { %1963 = vrot.lane.b32.xlu2 %v1955_v41, %s2562_s13  ;;  %v1954_v8 = vmul.f32 %v1951_v6, %v2777_v7  ;;  %v1975_v12 = vmul.f32 %v1972_v9, %v2789_v15  ;;  %v1982_v16 = vrot.slane %v1976_v61, 4  ;;  %v1995_v15 = vld [vmem:[#allocation5 + $0x30] sm:$0xf] }
 0x512   : > { %1959 = vrot.lane.b32.xlu0 %v1953_v5, %s2562_s13  ;;  %v1980_v46 = vrot.slane %v1974_v11, 4 }
 0x513   : > { %1961 = vrot.lane.b32.xlu1 %v1954_v8, %s2562_s13  ;;  %v1981_v7 = vrot.slane %v1975_v12, 4  ;;  %v1918_v8 = vld [vmem:[#allocation5] sm:$0xf] }
 0x514   : > { %v1920_v11 = vmul.f32 %v2727_v42, %v1918_v8 }
 0x516   : > { %v1874_v14 = vpop.permute.xlu1 %1873  ;;  %v1997_v20 = vld [vmem:[#allocation5 + $0x40] sm:$0xf]  ;;  %v2015_v22 = vld [vmem:[#allocation5 + $0x40] sm:$0xf0] }
 0x517   : > { %v1884_v62 = vsel %vm727_vm10, %v1874_v14, %v1876_v49  ;;  %1910 = vst.msk [vmem:[#allocation5 + $0x48] sm:$0xff] %vm748_vm9, %v1874_v14  ;;  %v1996_v18 = vld [vmem:[#allocation5 + $0x38] sm:$0xf]  ;;  %v2014_v21 = vld [vmem:[#allocation5 + $0x38] sm:$0xf0]  ;;  %v2018_v27 = vmul.f32 %v2799_v24, %v2015_v22  ;;  %v2042_v24 = vmul.f32 %v2818_v39, %v2039_v32 }
 0x518   : > { %1911 = vst [vmem:[#allocation5 + $0x50] sm:$0xff] %v1884_v62  ;;  %v2017_v26 = vmul.f32 %v2014_v21, %v2810_v33 }
 0x519   : > { %1983 = vrot.lane.b32.xlu2 %v1980_v46, %s2563_s14  ;;  %v2024_v30 = vrot.slane %v2018_v27, 4 }
 0x51a   : > { %1985 = vrot.lane.b32.xlu0 %v1981_v7, %s2563_s14  ;;  %v2023_v28 = vrot.slane %v2017_v26, 4  ;;  %v1927_v7 = vadd.f32 %v3081_v35, %v1920_v11 }
 0x51b   : > { %1987 = vrot.lane.b32.xlu1 %v1982_v16, %s2563_s14 }
 0x51e   : > { %v1880_v3 = vpop.permute.xlu1 %1879  ;;  %v1878_v17 = vpop.permute.xlu0 %1877  ;;  %v2037_v13 = vld [vmem:[#allocation5 + $0x48] sm:$0xf]  ;;  %v2058_v33 = vld [vmem:[#allocation5 + $0x48] sm:$0xf0] }
 0x51f   : > { %1915 = vst.msk [vmem:[#allocation5 + $0x70] sm:$0xf] %vm764_vm11, %v1880_v3  ;;  %v1885_v2 = vsel %vm727_vm10, %v1878_v17, %v1880_v3  ;;  %v2038_v31 = vld [vmem:[#allocation5 + $0x50] sm:$0xf]  ;;  %v2040_v34 = vmul.f32 %v2821_v44, %v2037_v13  ;;  %v2059_v36 = vld [vmem:[#allocation5 + $0x50] sm:$0xf0] }
 0x520   : > { %1913 = vst.msk [vmem:[#allocation5 + $0x60] sm:$0xf] %vm761_vm14, %v1878_v17  ;;  %v2041_v25 = vmul.f32 %v2038_v31, %v2826_v50  ;;  %v2064_v38 = vrot.slane %v2058_v33, 4  ;;  %v2065_v47 = vrot.slane %v2059_v36, 4 }
 0x521   : > { %1914 = vst [vmem:[#allocation5 + $0x68] sm:$0xf] %v1885_v2  ;;  %2001 = vrot.lane.b32.xlu2 %v1995_v15, %s2564_s15 }
 0x522   : > { %2003 = vrot.lane.b32.xlu0 %v1996_v18, %s2564_s15 }
 0x523   : > { %2005 = vrot.lane.b32.xlu1 %v1997_v20, %s2564_s15 }
 0x526   : > { %v2081_v49 = vld [vmem:[#allocation5 + $0x70] sm:$0xf] }
 0x527   : > { %v2079_v44 = vld [vmem:[#allocation5 + $0x60] sm:$0xf]  ;;  %v2084_v52 = vmul.f32 %v2837_v58, %v2081_v49  ;;  %v1919_v58 = vld [vmem:[#allocation5 + $0x8] sm:$0xf] }
 0x528   : > { %v2080_v50 = vld [vmem:[#allocation5 + $0x68] sm:$0xf]  ;;  %v2082_v39 = vmul.f32 %v2840_v59, %v2079_v44  ;;  %v1921_v9 = vmul.f32 %v2729_v43, %v1919_v58 }
 0x529   : > { %2025 = vrot.lane.b32.xlu2 %v2022_v29, %s2565_s17  ;;  %v2083_v51 = vmul.f32 %v2080_v50, %v2845_v4 }
 0x52a   : > { %2027 = vrot.lane.b32.xlu0 %v2023_v28, %s2565_s17  ;;  %v1928_v14 = vadd.f32 %v3081_v35, %v1921_v9 }
 0x52b   : > { %2029 = vrot.lane.b32.xlu1 %v2024_v30, %s2565_s17 }
 0x531   : > { %2046 = vrot.lane.b32.xlu2 %v2040_v34, %s2566_s19 }
 0x532   : > { %2048 = vrot.lane.b32.xlu0 %v2041_v25, %s2566_s19 }
 0x533   : > { %2050 = vrot.lane.b32.xlu1 %v2042_v24, %s2566_s19 }
 0x539   : > { %2067 = vrot.lane.b32.xlu2 %v2064_v38, %s2567_s28 }
 0x53a   : > { %2069 = vrot.lane.b32.xlu0 %v2065_v47, %s2567_s28 }
 0x53b   : > { %2071 = vrot.lane.b32.xlu1 %v2066_v48, %s2567_s28 }
 0x541   : > { %2088 = vrot.lane.b32.xlu2 %v2082_v39, %s2568_s27 }
 0x542   : > { %2090 = vrot.lane.b32.xlu0 %v2083_v51, %s2568_s27  ;;  %v1562_v51 = vld [vmem:[#allocation4] sm:$0xff] }
 0x543   : > { %2092 = vrot.lane.b32.xlu1 %v2084_v52, %s2568_s27 }
 0x54b   : > { %v1943_v45 = vpop.permute.xlu2 %1942 }
 0x56b   : > { %v1964_v53 = vpop.permute.xlu2 %1963 }
 0x573   : > { %v1984_v56 = vpop.permute.xlu2 %1983 }
 0x57b   : > { %v1939_v54 = vpop.permute.xlu0 %1938  ;;  %v2002_v0 = vpop.permute.xlu2 %2001 }
 0x57c   : > { %v1941_v55 = vpop.permute.xlu1 %1940 }
 0x57d   : > { %v1945_v61 = vsel %vm793_vm2, %v1941_v55, %v1943_v45  ;;  %v1944_v62 = vsel %vm793_vm2, %v1939_v54, %v1941_v55 }
 0x57e   : > { %v1949_v16 = vadd.f32 %v1945_v61, %v1928_v14  ;;  %v1948_v43 = vadd.f32 %v1944_v62, %v1927_v7 }
 0x583   : > { %v2026_v41 = vpop.permute.xlu2 %2025 }
 0x584   : > { %v1960_v57 = vpop.permute.xlu0 %1959 }
 0x585   : > { %v1962_v60 = vpop.permute.xlu1 %1961 }
 0x586   : > { %v1966_v46 = vsel %vm826_vm5, %v1962_v60, %v1964_v53  ;;  %v1965_v3 = vsel %vm826_vm5, %v1960_v57, %v1962_v60 }
 0x587   : > { %v1970_v2 = vadd.f32 %v1966_v46, %v1949_v16  ;;  %v1969_v21 = vadd.f32 %v1965_v3, %v1948_v43 }
 0x58b   : > { %v2047_v40 = vpop.permute.xlu2 %2046 }
 0x58c   : > { %v1986_v63 = vpop.permute.xlu0 %1985 }
 0x58d   : > { %v1988_v59 = vpop.permute.xlu1 %1987  ;;  %v1989_v42 = vsel %vm862_vm6, %v1984_v56, %v1986_v63 }
 0x58e   : > { %v1990_v17 = vsel %vm862_vm6, %v1986_v63, %v1988_v59  ;;  %v1993_v26 = vadd.f32 %v1989_v42, %v1969_v21 }
 0x58f   : > { %v1994_v20 = vadd.f32 %v1990_v17, %v1970_v2 }
 0x593   : > { %v2068_v15 = vpop.permute.xlu2 %2067 }
 0x594   : > { %v2004_v1 = vpop.permute.xlu0 %2003 }
 0x595   : > { %v2006_v4 = vpop.permute.xlu1 %2005  ;;  %v2007_v23 = vsel %vm881_vm7, %v2002_v0, %v2004_v1 }
 0x596   : > { %v2008_v19 = vsel %vm881_vm7, %v2004_v1, %v2006_v4  ;;  %v2011_v30 = vadd.f32 %v2007_v23, %v1993_v26 }
 0x597   : > { %v2012_v27 = vadd.f32 %v2008_v19, %v1994_v20 }
 0x59b   : > { %v2089_v36 = vpop.permute.xlu2 %2088 }
 0x59c   : > { %v2028_v5 = vpop.permute.xlu0 %2027 }
 0x59d   : > { %v2030_v6 = vpop.permute.xlu1 %2029  ;;  %v2031_v29 = vsel %vm915_vm8, %v2026_v41, %v2028_v5 }
 0x59e   : > { %v2032_v35 = vsel %vm915_vm8, %v2028_v5, %v2030_v6  ;;  %v2035_v34 = vadd.f32 %v2031_v29, %v2011_v30 }
 0x59f   : > { %v2036_v13 = vadd.f32 %v2032_v35, %v2012_v27 }
 0x5a4   : > { %v2049_v10 = vpop.permute.xlu0 %2048 }
 0x5a5   : > { %v2051_v12 = vpop.permute.xlu1 %2050  ;;  %v2052_v31 = vsel %vm946_vm12, %v2047_v40, %v2049_v10 }
 0x5a6   : > { %v2053_v28 = vsel %vm946_vm12, %v2049_v10, %v2051_v12  ;;  %v2056_v37 = vadd.f32 %v2052_v31, %v2035_v34 }
 0x5a7   : > { %v2057_v25 = vadd.f32 %v2053_v28, %v2036_v13 }
 0x5ac   : > { %v2070_v18 = vpop.permute.xlu0 %2069 }
 0x5ad   : > { %v2072_v22 = vpop.permute.xlu1 %2071  ;;  %v2073_v24 = vsel %vm968_vm13, %v2068_v15, %v2070_v18 }
 0x5ae   : > { %v2074_v32 = vsel %vm968_vm13, %v2070_v18, %v2072_v22  ;;  %v2077_v50 = vadd.f32 %v2073_v24, %v2056_v37 }
 0x5af   : > { %v2078_v38 = vadd.f32 %v2074_v32, %v2057_v25 }
 0x5b4   : > { %v2091_v33 = vpop.permute.xlu0 %2090 }
 0x5b5   : > { %v2093_v47 = vpop.permute.xlu1 %2092  ;;  %v2094_v48 = vsel %vm999_vm15, %v2089_v36, %v2091_v33 }
 0x5b6   : > { %v2095_v44 = vsel %vm999_vm15, %v2091_v33, %v2093_v47  ;;  %v2098_v39 = vadd.f32 %v2094_v48, %v2077_v50 }
 0x5b7   : > { %v2099_v49 = vadd.f32 %v2095_v44, %v2078_v38 }
 0x5b9   : > { %v2102_v52 = vrot.slane %v2099_v49, 4 }
 0x5ba   : > { %2110 = sbr.rel (%p2417_p8) target bundleno = 1502 (0x5de), region = 48 }
 0x5bb   : > { %v2103_v45 = vsel %vm444_vm3, %v2098_v39, %v2102_v52 }
 0x5bc   : > { %v2105_v53 = vadd.f32 %v2103_v45, %v1562_v51 }
 0x5be   : > { %2106 = vst [vmem:[#allocation4] sm:$0xff] %v2105_v53 }
 0x5bf   : > { %v2111_v54 = vld [vmem:[#allocation2] sm:$0xff]  ;;  %v2120_v55 = vld [vmem:[#allocation3] sm:$0xff] }
 0x5c0   : > { %2113 = vst [vmem:[#allocation1] ss:$2 sm:$0xff] %v2111_v54 }
 0x5c5   : > { %v2130_v60 = vld [vmem:[#allocation4] sm:$0xff] }
 0x5c7   : > { %v2114_v56 = vld.sshfl [vmem:[#allocation1] sm:$0xff pattern:$0x75316420]  ;;  %v2115_v57 = vld.sshfl [vmem:[#allocation1 + $0x8] sm:$0xff pattern:$0x75316420] }
 0x5c8   : > { %2118 = vst [vmem:[%s2646_s12] sm:$0xf] %v2114_v56 }
 0x5c9   : > { %2119 = vst [vmem:[%s2646_s12 + $0x8] sm:$0xf] %v2115_v57 }
 0x5ca   : > { %2123 = vst [vmem:[#allocation1 + $0x1] ss:$2 sm:$0xff] %v2120_v55 }
 0x5d1   : > { %v2124_v63 = vld.sshfl [vmem:[#allocation1] sm:$0xff pattern:$0x75316420]  ;;  %v2125_v0 = vld.sshfl [vmem:[#allocation1 + $0x8] sm:$0xff pattern:$0x75316420] }
 0x5d2   : > { %2128 = vst [vmem:[%s2646_s12] sm:$0xf0] %v2124_v63 }
 0x5d3   : > { %2129 = vst [vmem:[%s2646_s12 + $0x8] sm:$0xf0] %v2125_v0 }
 0x5d4   : > { %2132 = vst [vmem:[#allocation1] ss:$2 sm:$0xff] %v2130_v60 }
 0x5db   : > { %v2133_v59 = vld.sshfl [vmem:[#allocation1] sm:$0xff pattern:$0x75316420]  ;;  %v2134_v1 = vld.sshfl [vmem:[#allocation1 + $0x8] sm:$0xff pattern:$0x75316420] }
 0x5dc   : > { %2137 = vst [vmem:[%s2646_s12 + $0x10] sm:$0xf] %v2133_v59 }
 0x5dd   : > { %2138 = vst [vmem:[%s2646_s12 + $0x18] sm:$0xf] %v2134_v1 }
 0x5de PF: > { %s15_s22 = sadd.s32 1, %s2550_s22   ;;  %s3186_s18 = smov %s2542_s20 }
 0x5df   : > { %p12_p9 = scmp.ge.s32.totalorder %s15_s22, 42   ;;  %s3187_s19 = smov %s2546_s21 }
 0x5e0   : > { %s3188_s20 = smov %s3191_s23  ;;  %s3189_s21 = smov %s3195_s24 }
 0x5e1   :  { %14 = sbr.rel (!%p12_p9) target bundleno = 3 (0x3), region = 101 }

</bundles_post_ra>
